<compile_context>
chip_gen: v7x
topology: tpu7x:2x2x1
jax: 0.10.0
libtpu: 0.0.40
codegen_flags: <defaults>
</compile_context>

<pallas_src>
import math
from functools import partial

import jax
import jax.numpy as jnp
from jax.experimental import pallas as pl
from jax.experimental.pallas import tpu as pltpu


# ---------------------------------------------------------------------------
# Fused encoder-stack kernel: grid = (batch_block, layer)
# ---------------------------------------------------------------------------
def encoder_stack_kernel(x_ref, pe_ref, bias_ref,
                         wqkv_ref, bqkv_ref, wo_ref, bo_ref,
                         w1_ref, b1_ref, w2_ref, b2_ref,
                         g1_ref, be1_ref, g2_ref, be2_ref,
                         o_ref, *, num_heads, scale):
    l = pl.program_id(1)

    # Layer 0: fused embedding-scale + positional-encoding add (dropout = id).
    @pl.when(l == 0)
    def _():
        o_ref[...] = x_ref[...] * scale + pe_ref[...][None, :, :]

    x = o_ref[...]                              # (Bblk, S, D) resident f32 act
    Bblk, S, D = x.shape
    H = num_heads
    dk = D // H
    BS = Bblk * S
    x2 = x.reshape(BS, D)                       # batch-blocked 2-D activation

    def linear(t, w_ref, b_ref):
        # bf16 MXU inputs, f32 accumulation; bias / residual math stays f32.
        y = jnp.dot(t.astype(jnp.bfloat16), w_ref[...],
                    preferred_element_type=jnp.float32)
        return y + b_ref[...]

    def layer_norm(t, g_ref, b_ref):
        # two-pass statistics (matches PyTorch LayerNorm, avoids cancellation)
        mu = jnp.mean(t, axis=-1, keepdims=True)
        d = t - mu
        var = jnp.mean(d * d, axis=-1, keepdims=True)
        return d * jax.lax.rsqrt(var + 1e-5) * g_ref[...] + b_ref[...]

    # ---------------- multi-head self-attention ------------------------------
    # fused QKV projection; 1/sqrt(dk) already folded into the Q weight columns
    qkv = linear(x2, wqkv_ref, bqkv_ref).astype(jnp.bfloat16)    # (BS, 3D)

    def to_heads(t):
        # (BS, D) -> (Bblk*H, S, dk) via static lane slices + major-axis stack
        # (no lax.transpose needed).
        t3 = t.reshape(Bblk, S, D)
        parts = [t3[:, :, i * dk:(i + 1) * dk] for i in range(H)]
        return jnp.stack(parts, axis=1).reshape(Bblk * H, S, dk)

    qh = to_heads(qkv[:, :D])
    kh = to_heads(qkv[:, D:2 * D])
    vh = to_heads(qkv[:, 2 * D:])

    # TODO(synk): for long sequences (S >~ 1k) chunk K/V with online softmax
    # instead of materializing the full (Bblk*H, S, S) score tensor.
    s = jnp.einsum('bqd,bkd->bqk', qh, kh,
                   preferred_element_type=jnp.float32)           # (Bblk*H, S, S)
    s = s + bias_ref[...][None, :, :]             # additive mask (0 / -1e30)
    m = jnp.max(s, axis=-1, keepdims=True)
    p = jnp.exp(s - m)
    row_sum = jnp.sum(p, axis=-1, keepdims=True)
    ctx_h = jnp.einsum('bqk,bkd->bqd', p.astype(jnp.bfloat16), vh,
                       preferred_element_type=jnp.float32)       # (Bblk*H, S, dk)
    # normalize AFTER the PV matmul (S*dk work instead of H*S*S)
    ctx_h = ctx_h * pl.reciprocal(row_sum, approx=True)

    ctx4 = ctx_h.reshape(Bblk, H, S, dk)
    ctx = jnp.concatenate([ctx4[:, i] for i in range(H)],
                          axis=-1).reshape(BS, D)                # (BS, D)

    attn_out = linear(ctx, wo_ref, bo_ref)
    # dropout1 is identity (eval mode)
    x2 = layer_norm(x2 + attn_out, g1_ref, be1_ref)

    # ---------------- position-wise feed forward -----------------------------
    # TODO(synk): for very large F on v7x (64 MiB VMEM), chunk w1/w2 over F.
    h = jnp.maximum(linear(x2, w1_ref, b1_ref), 0.0)
    ff = linear(h, w2_ref, b2_ref)
    # dropout2 is identity (eval mode)
    y = layer_norm(x2 + ff, g2_ref, be2_ref)

    o_ref[...] = y.reshape(Bblk, S, D)


# ---------------------------------------------------------------------------
# Parameter construction (deterministic, synthetic), stacked over layers
# ---------------------------------------------------------------------------
def make_params(key, vocab, D, F, num_layers, num_heads, max_len):
    assert D % num_heads == 0
    dk = D // num_heads
    keys = jax.random.split(key, 1 + num_layers)
    emb = jax.random.normal(keys[0], (vocab, D), jnp.float32) * 0.1

    # sinusoidal positional encoding table, shape (max_len, D)
    pos = jnp.arange(max_len, dtype=jnp.float32)[:, None]
    term = jnp.exp(jnp.arange(0, D, 2, dtype=jnp.float32)
                   * (-math.log(10000.0) / D))
    pe = jnp.zeros((max_len, D), jnp.float32)
    pe = pe.at[:, 0::2].set(jnp.sin(pos * term))
    pe = pe.at[:, 1::2].set(jnp.cos(pos * term))

    def lin(kk, din, dout):
        w = jax.random.normal(kk, (din, dout), jnp.float32) / math.sqrt(din)
        b = jnp.zeros((1, dout), jnp.float32)
        return w, b

    names = ('wqkv', 'bqkv', 'wo', 'bo', 'w1', 'b1', 'w2', 'b2',
             'g1', 'be1', 'g2', 'be2')
    stacks = {n: [] for n in names}
    inv_sqrt_dk = 1.0 / math.sqrt(dk)
    for i in range(num_layers):
        k = jax.random.split(keys[1 + i], 6)
        wq, bq = lin(k[0], D, D)
        wk, bk = lin(k[1], D, D)
        wv, bv = lin(k[2], D, D)
        wo, bo = lin(k[3], D, D)
        w1, b1 = lin(k[4], D, F)
        w2, b2 = lin(k[5], F, D)
        # fold 1/sqrt(dk) into the Q projection (one-time rescale, same forward)
        stacks['wqkv'].append(jnp.concatenate([wq * inv_sqrt_dk, wk, wv], axis=1))
        stacks['bqkv'].append(jnp.concatenate([bq * inv_sqrt_dk, bk, bv], axis=1))
        stacks['wo'].append(wo); stacks['bo'].append(bo)
        stacks['w1'].append(w1); stacks['b1'].append(b1)
        stacks['w2'].append(w2); stacks['b2'].append(b2)
        stacks['g1'].append(jnp.ones((1, D), jnp.float32))
        stacks['be1'].append(jnp.zeros((1, D), jnp.float32))
        stacks['g2'].append(jnp.ones((1, D), jnp.float32))
        stacks['be2'].append(jnp.zeros((1, D), jnp.float32))

    params = {n: jnp.stack(v, axis=0) for n, v in stacks.items()}
    # matmul weights -> bf16 (MXU), biases / LayerNorm params stay f32
    for n in ('wqkv', 'wo', 'w1', 'w2'):
        params[n] = params[n].astype(jnp.bfloat16)
    return emb, pe, params


# ---------------------------------------------------------------------------
# VMEM sizing helpers
# ---------------------------------------------------------------------------
def _vmem_estimate_bytes(bblk, S, D, F, H):
    bf, f4 = 2, 4
    layer_w = (D * 3 * D + D * D + D * F + F * D) * bf \
              + (3 * D + D + F + D + 4 * D) * f4
    act_blocks = 2 * bblk * S * D * f4                 # in + out activation blocks
    consts = S * D * f4 + S * S * bf                   # pos-enc + mask bias
    pipelined = 2 * (layer_w + act_blocks + consts)    # double-buffered
    BS = bblk * S
    workset = (BS * 3 * D * f4                         # qkv
               + 2 * bblk * H * S * S * f4             # scores + exp(p)
               + BS * F * f4                           # ffn hidden
               + 6 * BS * D * f4)                      # misc temporaries
    return pipelined + workset


def _pick_bblk(B, S, D, F, H, budget_bytes=40 * 2 ** 20):
    best = 1
    for d in range(1, B + 1):
        if B % d:
            continue
        if B > 1 and (B // d) < 2:      # keep >=2 parallel grid steps (megacore)
            continue
        if _vmem_estimate_bytes(d, S, D, F, H) <= budget_bytes:
            best = max(best, d)
    return best


# ---------------------------------------------------------------------------
# Forward wrapper
# ---------------------------------------------------------------------------
def encoder_forward(tokens, mask, emb, pe, params, num_heads):
    S, B = tokens.shape
    D = emb.shape[1]
    L = params['wqkv'].shape[0]
    F = params['w1'].shape[2]

    # TODO(synk): embedding gather (nn.Embedding lookup) stays in plain JAX.
    e = jnp.take(emb, tokens.T, axis=0).astype(jnp.float32)          # (B, S, D)
    pe_s = pe[:S]                                                    # (S, D)
    # additive mask bias in bf16: 0 where allowed, -1e30 where blocked
    mask_bias = jnp.where(mask.astype(bool), -1e30, 0.0).astype(jnp.bfloat16)

    bblk = _pick_bblk(B, S, D, F, num_heads)
    est = _vmem_estimate_bytes(bblk, S, D, F, num_heads)
    vmem_limit = int(min(max(2 * est, 32 * 2 ** 20), 48 * 2 ** 20))

    xmap = lambda b, l: (b, 0, 0)      # per-batch-block activation tiles
    wmap = lambda b, l: (l, 0, 0)      # per-layer weight tiles
    cmap = lambda b, l: (0, 0)         # constants (PE, mask), constant index

    out = pl.pallas_call(
        partial(encoder_stack_kernel, num_heads=num_heads, scale=math.sqrt(D)),
        out_shape=jax.ShapeDtypeStruct((B, S, D), jnp.float32),
        grid_spec=pltpu.PrefetchScalarGridSpec(
            num_scalar_prefetch=0,
            grid=(B // bblk, L),
            in_specs=[
                pl.BlockSpec((bblk, S, D), xmap),          # raw embedding
                pl.BlockSpec((S, D), cmap),                # positional encoding
                pl.BlockSpec((S, S), cmap),                # additive mask (bf16)
                pl.BlockSpec((None, D, 3 * D), wmap),      # wqkv (bf16)
                pl.BlockSpec((None, 1, 3 * D), wmap),      # bqkv
                pl.BlockSpec((None, D, D), wmap),          # wo (bf16)
                pl.BlockSpec((None, 1, D), wmap),          # bo
                pl.BlockSpec((None, D, F), wmap),          # w1 (bf16)
                pl.BlockSpec((None, 1, F), wmap),          # b1
                pl.BlockSpec((None, F, D), wmap),          # w2 (bf16)
                pl.BlockSpec((None, 1, D), wmap),          # b2
                pl.BlockSpec((None, 1, D), wmap),          # gamma1
                pl.BlockSpec((None, 1, D), wmap),          # beta1
                pl.BlockSpec((None, 1, D), wmap),          # gamma2
                pl.BlockSpec((None, 1, D), wmap),          # beta2
            ],
            out_specs=pl.BlockSpec((bblk, S, D), xmap),
        ),
        compiler_params=pltpu.CompilerParams(
            dimension_semantics=("parallel", "arbitrary"),
            vmem_limit_bytes=vmem_limit),
    )(e, pe_s, mask_bias,
      params['wqkv'], params['bqkv'], params['wo'], params['bo'],
      params['w1'], params['b1'], params['w2'], params['b2'],
      params['g1'], params['be1'], params['g2'], params['be2'])

    # Return seq-first (S, B, D) to match the PyTorch module's layout.
    return jnp.transpose(out, (1, 0, 2))


# ---------------------------------------------------------------------------
if __name__ == "__main__":
    # Lane-aligned small config: D, 3D, F multiples of 128; S multiple of 16.
    vocab, D, F, L, H, max_len = 32, 128, 256, 2, 4, 32
    S, B = 16, 4

    key = jax.random.PRNGKey(0)
    kp, kt = jax.random.split(key)
    emb, pe, params = make_params(kp, vocab, D, F, L, H, max_len)

    tokens = jax.random.randint(kt, (S, B), 0, vocab, dtype=jnp.int32)
    # src_mask semantics = masked_fill(mask, -inf): True entries are blocked.
    # Block the last two key positions for every query (no fully-masked rows).
    mask = jnp.broadcast_to((jnp.arange(S) >= S - 2)[None, :], (S, S))

    # TODO(synk): top-level dropout(encod) and per-layer dropouts are identity
    # (eval mode / drop_prob = 0); no stochastic dropout is implemented.
    out = encoder_forward(tokens, mask, emb, pe, params, num_heads=H)
    out = jax.block_until_ready(out)
    assert out.shape == (S, B, D)
    assert bool(jnp.isfinite(out).all())
    print("KERNEL_OK")
</pallas_src>

<mosaic_0001>
module attributes {stable_mosaic.version = 11 : i64} {
  func.func @encoder_stack_kernel(%arg0: i32, %arg1: i32, %arg2: memref<2x16x128xf32, #tpu.memory_space<vmem>>, %arg3: memref<16x128xf32, #tpu.memory_space<vmem>>, %arg4: memref<16x16xbf16, #tpu.memory_space<vmem>>, %arg5: memref<1x128x384xbf16, #tpu.memory_space<vmem>>, %arg6: memref<1x1x384xf32, #tpu.memory_space<vmem>>, %arg7: memref<1x128x128xbf16, #tpu.memory_space<vmem>>, %arg8: memref<1x1x128xf32, #tpu.memory_space<vmem>>, %arg9: memref<1x128x256xbf16, #tpu.memory_space<vmem>>, %arg10: memref<1x1x256xf32, #tpu.memory_space<vmem>>, %arg11: memref<1x256x128xbf16, #tpu.memory_space<vmem>>, %arg12: memref<1x1x128xf32, #tpu.memory_space<vmem>>, %arg13: memref<1x1x128xf32, #tpu.memory_space<vmem>>, %arg14: memref<1x1x128xf32, #tpu.memory_space<vmem>>, %arg15: memref<1x1x128xf32, #tpu.memory_space<vmem>>, %arg16: memref<1x1x128xf32, #tpu.memory_space<vmem>>, %arg17: memref<2x16x128xf32, #tpu.memory_space<vmem>>) attributes {dimension_semantics = [#tpu.dimension_semantics<parallel>, #tpu.dimension_semantics<arbitrary>], iteration_bounds = array<i64: 2, 2>, scalar_prefetch = 0 : i64, scratch_operands = 0 : i64, tpu.core_type = #tpu.core_type<tc>, window_params = [{transform_indices = @transform_0, window_bounds = array<i64: 2, 16, 128>}, {pipeline_mode = #tpu.pipeline_mode<synchronous>, transform_indices = @transform_1, window_bounds = array<i64: 16, 128>}, {pipeline_mode = #tpu.pipeline_mode<synchronous>, transform_indices = @transform_2, window_bounds = array<i64: 16, 16>}, {transform_indices = @transform_3, window_bounds = array<i64: 1, 128, 384>}, {transform_indices = @transform_4, window_bounds = array<i64: 1, 1, 384>}, {transform_indices = @transform_5, window_bounds = array<i64: 1, 128, 128>}, {transform_indices = @transform_6, window_bounds = array<i64: 1, 1, 128>}, {transform_indices = @transform_7, window_bounds = array<i64: 1, 128, 256>}, {transform_indices = @transform_8, window_bounds = array<i64: 1, 1, 256>}, {transform_indices = @transform_9, window_bounds = array<i64: 1, 256, 128>}, {transform_indices = @transform_10, window_bounds = array<i64: 1, 1, 128>}, {transform_indices = @transform_11, window_bounds = array<i64: 1, 1, 128>}, {transform_indices = @transform_12, window_bounds = array<i64: 1, 1, 128>}, {transform_indices = @transform_13, window_bounds = array<i64: 1, 1, 128>}, {transform_indices = @transform_14, window_bounds = array<i64: 1, 1, 128>}, {transform_indices = @transform_15, window_bounds = array<i64: 2, 16, 128>}]} {
    %c0_i32 = arith.constant 0 : i32
    %0 = arith.cmpi eq, %arg1, %c0_i32 : i32
    %1 = arith.extui %0 : i1 to i32
    %c0_i32_0 = arith.constant 0 : i32
    %2 = arith.cmpi ne, %1, %c0_i32_0 : i32
    scf.if %2 {
      %c0_62 = arith.constant 0 : index
      %c0_63 = arith.constant 0 : index
      %c0_64 = arith.constant 0 : index
      %157 = vector.load %arg2[%c0_62, %c0_63, %c0_64] : memref<2x16x128xf32, #tpu.memory_space<vmem>>, vector<2x16x128xf32>
      %cst_65 = arith.constant 11.3137083 : f32
      %158 = vector.broadcast %cst_65 : f32 to vector<2x16x128xf32>
      %159 = arith.mulf %157, %158 : vector<2x16x128xf32>
      %c0_66 = arith.constant 0 : index
      %c0_67 = arith.constant 0 : index
      %160 = vector.load %arg3[%c0_66, %c0_67] : memref<16x128xf32, #tpu.memory_space<vmem>>, vector<16x128xf32>
      %161 = vector.shape_cast %160 : vector<16x128xf32> to vector<1x16x128xf32>
      %162 = vector.broadcast %161 : vector<1x16x128xf32> to vector<2x16x128xf32>
      %163 = arith.addf %159, %162 : vector<2x16x128xf32>
      %c0_68 = arith.constant 0 : index
      %c0_69 = arith.constant 0 : index
      %c0_70 = arith.constant 0 : index
      %164 = vector.load %arg17[%c0_68, %c0_69, %c0_70] : memref<2x16x128xf32, #tpu.memory_space<vmem>>, vector<2x16x128xf32>
      tpu.vector_store %arg17[%c0_68, %c0_69, %c0_70], %163 {strides = array<i32>} : memref<2x16x128xf32, #tpu.memory_space<vmem>>, vector<2x16x128xf32>,
    } else {
    }
    %c0 = arith.constant 0 : index
    %c0_1 = arith.constant 0 : index
    %c0_2 = arith.constant 0 : index
    %3 = vector.load %arg17[%c0, %c0_1, %c0_2] : memref<2x16x128xf32, #tpu.memory_space<vmem>>, vector<2x16x128xf32>
    %4 = vector.shape_cast %3 : vector<2x16x128xf32> to vector<32x128xf32>
    %5 = arith.truncf %4 : vector<32x128xf32> to vector<32x128xbf16>
    %c0_3 = arith.constant 0 : index
    %c0_4 = arith.constant 0 : index
    %c0_5 = arith.constant 0 : index
    %6 = vector.load %arg5[%c0_3, %c0_4, %c0_5] : memref<1x128x384xbf16, #tpu.memory_space<vmem>>, vector<1x128x384xbf16>
    %7 = vector.shape_cast %6 : vector<1x128x384xbf16> to vector<128x384xbf16>
    %cst = arith.constant dense<0.000000e+00> : vector<32x384xf32>
    %8 = tpu.matmul %5, %7, %cst {dimension_numbers = #tpu.dot_dimension_numbers<[1], [0], [0], [1], [0, 0, 1, 1], [], []>} : vector<32x128xbf16>, vector<128x384xbf16>, vector<32x384xf32> -> vector<32x384xf32>
    %c0_6 = arith.constant 0 : index
    %c0_7 = arith.constant 0 : index
    %c0_8 = arith.constant 0 : index
    %9 = vector.load %arg6[%c0_6, %c0_7, %c0_8] : memref<1x1x384xf32, #tpu.memory_space<vmem>>, vector<1x1x384xf32>
    %10 = vector.shape_cast %9 : vector<1x1x384xf32> to vector<1x384xf32>
    %11 = vector.broadcast %10 : vector<1x384xf32> to vector<32x384xf32>
    %12 = arith.addf %8, %11 : vector<32x384xf32>
    %13 = arith.truncf %12 : vector<32x384xf32> to vector<32x384xbf16>
    %14 = vector.extract_strided_slice %13 {offsets = [0, 0], sizes = [32, 128], strides = [1, 1]} : vector<32x384xbf16> to vector<32x128xbf16>
    %15 = vector.shape_cast %14 : vector<32x128xbf16> to vector<2x16x128xbf16>
    %16 = vector.extract_strided_slice %15 {offsets = [0, 0, 0], sizes = [2, 16, 32], strides = [1, 1, 1]} : vector<2x16x128xbf16> to vector<2x16x32xbf16>
    %17 = vector.extract_strided_slice %15 {offsets = [0, 0, 32], sizes = [2, 16, 32], strides = [1, 1, 1]} : vector<2x16x128xbf16> to vector<2x16x32xbf16>
    %18 = vector.extract_strided_slice %15 {offsets = [0, 0, 64], sizes = [2, 16, 32], strides = [1, 1, 1]} : vector<2x16x128xbf16> to vector<2x16x32xbf16>
    %19 = vector.extract_strided_slice %15 {offsets = [0, 0, 96], sizes = [2, 16, 32], strides = [1, 1, 1]} : vector<2x16x128xbf16> to vector<2x16x32xbf16>
    %20 = vector.shape_cast %16 : vector<2x16x32xbf16> to vector<2x1x16x32xbf16>
    %21 = vector.shape_cast %17 : vector<2x16x32xbf16> to vector<2x1x16x32xbf16>
    %22 = vector.shape_cast %18 : vector<2x16x32xbf16> to vector<2x1x16x32xbf16>
    %23 = vector.shape_cast %19 : vector<2x16x32xbf16> to vector<2x1x16x32xbf16>
    %24 = tpu.concatenate %20, %21, %22, %23 in 1 : vector<2x1x16x32xbf16>, vector<2x1x16x32xbf16>, vector<2x1x16x32xbf16>, vector<2x1x16x32xbf16> -> vector<2x4x16x32xbf16>
    %25 = vector.shape_cast %24 : vector<2x4x16x32xbf16> to vector<8x16x32xbf16>
    %26 = vector.extract_strided_slice %13 {offsets = [0, 128], sizes = [32, 128], strides = [1, 1]} : vector<32x384xbf16> to vector<32x128xbf16>
    %27 = vector.shape_cast %26 : vector<32x128xbf16> to vector<2x16x128xbf16>
    %28 = vector.extract_strided_slice %27 {offsets = [0, 0, 0], sizes = [2, 16, 32], strides = [1, 1, 1]} : vector<2x16x128xbf16> to vector<2x16x32xbf16>
    %29 = vector.extract_strided_slice %27 {offsets = [0, 0, 32], sizes = [2, 16, 32], strides = [1, 1, 1]} : vector<2x16x128xbf16> to vector<2x16x32xbf16>
    %30 = vector.extract_strided_slice %27 {offsets = [0, 0, 64], sizes = [2, 16, 32], strides = [1, 1, 1]} : vector<2x16x128xbf16> to vector<2x16x32xbf16>
    %31 = vector.extract_strided_slice %27 {offsets = [0, 0, 96], sizes = [2, 16, 32], strides = [1, 1, 1]} : vector<2x16x128xbf16> to vector<2x16x32xbf16>
    %32 = vector.shape_cast %28 : vector<2x16x32xbf16> to vector<2x1x16x32xbf16>
    %33 = vector.shape_cast %29 : vector<2x16x32xbf16> to vector<2x1x16x32xbf16>
    %34 = vector.shape_cast %30 : vector<2x16x32xbf16> to vector<2x1x16x32xbf16>
    %35 = vector.shape_cast %31 : vector<2x16x32xbf16> to vector<2x1x16x32xbf16>
    %36 = tpu.concatenate %32, %33, %34, %35 in 1 : vector<2x1x16x32xbf16>, vector<2x1x16x32xbf16>, vector<2x1x16x32xbf16>, vector<2x1x16x32xbf16> -> vector<2x4x16x32xbf16>
    %37 = vector.shape_cast %36 : vector<2x4x16x32xbf16> to vector<8x16x32xbf16>
    %38 = vector.extract_strided_slice %13 {offsets = [0, 256], sizes = [32, 128], strides = [1, 1]} : vector<32x384xbf16> to vector<32x128xbf16>
    %39 = vector.shape_cast %38 : vector<32x128xbf16> to vector<2x16x128xbf16>
    %40 = vector.extract_strided_slice %39 {offsets = [0, 0, 0], sizes = [2, 16, 32], strides = [1, 1, 1]} : vector<2x16x128xbf16> to vector<2x16x32xbf16>
    %41 = vector.extract_strided_slice %39 {offsets = [0, 0, 32], sizes = [2, 16, 32], strides = [1, 1, 1]} : vector<2x16x128xbf16> to vector<2x16x32xbf16>
    %42 = vector.extract_strided_slice %39 {offsets = [0, 0, 64], sizes = [2, 16, 32], strides = [1, 1, 1]} : vector<2x16x128xbf16> to vector<2x16x32xbf16>
    %43 = vector.extract_strided_slice %39 {offsets = [0, 0, 96], sizes = [2, 16, 32], strides = [1, 1, 1]} : vector<2x16x128xbf16> to vector<2x16x32xbf16>
    %44 = vector.shape_cast %40 : vector<2x16x32xbf16> to vector<2x1x16x32xbf16>
    %45 = vector.shape_cast %41 : vector<2x16x32xbf16> to vector<2x1x16x32xbf16>
    %46 = vector.shape_cast %42 : vector<2x16x32xbf16> to vector<2x1x16x32xbf16>
    %47 = vector.shape_cast %43 : vector<2x16x32xbf16> to vector<2x1x16x32xbf16>
    %48 = tpu.concatenate %44, %45, %46, %47 in 1 : vector<2x1x16x32xbf16>, vector<2x1x16x32xbf16>, vector<2x1x16x32xbf16>, vector<2x1x16x32xbf16> -> vector<2x4x16x32xbf16>
    %49 = vector.shape_cast %48 : vector<2x4x16x32xbf16> to vector<8x16x32xbf16>
    "tpu.trace_start"() <{level = 10 : i32, message = "bqd,bkd->bqk"}> : () -> ()
    %cst_9 = arith.constant dense<0.000000e+00> : vector<8x16x16xf32>
    %50 = tpu.matmul %25, %37, %cst_9 {dimension_numbers = #tpu.dot_dimension_numbers<[2], [2], [1], [1], [0, 0, 0, 1, 1, 1], [0], [0]>} : vector<8x16x32xbf16>, vector<8x16x32xbf16>, vector<8x16x16xf32> -> vector<8x16x16xf32>
    "tpu.trace_stop"() : () -> ()
    %c0_10 = arith.constant 0 : index
    %c0_11 = arith.constant 0 : index
    %51 = vector.load %arg4[%c0_10, %c0_11] : memref<16x16xbf16, #tpu.memory_space<vmem>>, vector<16x16xbf16>
    %52 = vector.shape_cast %51 : vector<16x16xbf16> to vector<1x16x16xbf16>
    %53 = arith.extf %52 : vector<1x16x16xbf16> to vector<1x16x16xf32>
    %54 = vector.broadcast %53 : vector<1x16x16xf32> to vector<8x16x16xf32>
    %55 = arith.addf %50, %54 : vector<8x16x16xf32>
    %cst_12 = arith.constant dense<0xFF800000> : vector<8x16xf32>
    %56 = vector.multi_reduction <maximumf>, %55, %cst_12 [2] : vector<8x16x16xf32> to vector<8x16xf32>
    %57 = vector.shape_cast %56 : vector<8x16xf32> to vector<8x16x1xf32>
    %58 = vector.broadcast %57 : vector<8x16x1xf32> to vector<8x16x16xf32>
    %59 = arith.subf %55, %58 : vector<8x16x16xf32>
    %60 = math.exp %59 : vector<8x16x16xf32>
    %cst_13 = arith.constant dense<0.000000e+00> : vector<8x16xf32>
    %61 = vector.multi_reduction <add>, %60, %cst_13 [2] : vector<8x16x16xf32> to vector<8x16xf32>
    %62 = vector.shape_cast %61 : vector<8x16xf32> to vector<8x16x1xf32>
    %63 = arith.truncf %60 : vector<8x16x16xf32> to vector<8x16x16xbf16>
    "tpu.trace_start"() <{level = 10 : i32, message = "bqk,bkd->bqd"}> : () -> ()
    %cst_14 = arith.constant dense<0.000000e+00> : vector<8x16x32xf32>
    %64 = tpu.matmul %63, %49, %cst_14 {dimension_numbers = #tpu.dot_dimension_numbers<[2], [1], [1], [2], [0, 0, 0, 1, 1, 2], [0], [0]>} : vector<8x16x16xbf16>, vector<8x16x32xbf16>, vector<8x16x32xf32> -> vector<8x16x32xf32>
    "tpu.trace_stop"() : () -> ()
    %65 = tpu.reciprocal %62 {approx = true} : vector<8x16x1xf32> -> vector<8x16x1xf32>
    %66 = vector.broadcast %65 : vector<8x16x1xf32> to vector<8x16x32xf32>
    %67 = arith.mulf %64, %66 : vector<8x16x32xf32>
    %68 = vector.shape_cast %67 : vector<8x16x32xf32> to vector<2x4x16x32xf32>
    %69 = vector.extract_strided_slice %68 {offsets = [0, 0, 0, 0], sizes = [2, 1, 16, 32], strides = [1, 1, 1, 1]} : vector<2x4x16x32xf32> to vector<2x1x16x32xf32>
    %70 = vector.shape_cast %69 : vector<2x1x16x32xf32> to vector<2x16x32xf32>
    %71 = vector.extract_strided_slice %68 {offsets = [0, 1, 0, 0], sizes = [2, 1, 16, 32], strides = [1, 1, 1, 1]} : vector<2x4x16x32xf32> to vector<2x1x16x32xf32>
    %72 = vector.shape_cast %71 : vector<2x1x16x32xf32> to vector<2x16x32xf32>
    %73 = vector.extract_strided_slice %68 {offsets = [0, 2, 0, 0], sizes = [2, 1, 16, 32], strides = [1, 1, 1, 1]} : vector<2x4x16x32xf32> to vector<2x1x16x32xf32>
    %74 = vector.shape_cast %73 : vector<2x1x16x32xf32> to vector<2x16x32xf32>
    %75 = vector.extract_strided_slice %68 {offsets = [0, 3, 0, 0], sizes = [2, 1, 16, 32], strides = [1, 1, 1, 1]} : vector<2x4x16x32xf32> to vector<2x1x16x32xf32>
    %76 = vector.shape_cast %75 : vector<2x1x16x32xf32> to vector<2x16x32xf32>
    %77 = tpu.concatenate %70, %72, %74, %76 in 2 : vector<2x16x32xf32>, vector<2x16x32xf32>, vector<2x16x32xf32>, vector<2x16x32xf32> -> vector<2x16x128xf32>
    %78 = vector.shape_cast %77 : vector<2x16x128xf32> to vector<32x128xf32>
    %79 = arith.truncf %78 : vector<32x128xf32> to vector<32x128xbf16>
    %c0_15 = arith.constant 0 : index
    %c0_16 = arith.constant 0 : index
    %c0_17 = arith.constant 0 : index
    %80 = vector.load %arg7[%c0_15, %c0_16, %c0_17] : memref<1x128x128xbf16, #tpu.memory_space<vmem>>, vector<1x128x128xbf16>
    %81 = vector.shape_cast %80 : vector<1x128x128xbf16> to vector<128x128xbf16>
    %cst_18 = arith.constant dense<0.000000e+00> : vector<32x128xf32>
    %82 = tpu.matmul %79, %81, %cst_18 {dimension_numbers = #tpu.dot_dimension_numbers<[1], [0], [0], [1], [0, 0, 1, 1], [], []>} : vector<32x128xbf16>, vector<128x128xbf16>, vector<32x128xf32> -> vector<32x128xf32>
    %c0_19 = arith.constant 0 : index
    %c0_20 = arith.constant 0 : index
    %c0_21 = arith.constant 0 : index
    %83 = vector.load %arg8[%c0_19, %c0_20, %c0_21] : memref<1x1x128xf32, #tpu.memory_space<vmem>>, vector<1x1x128xf32>
    %84 = vector.shape_cast %83 : vector<1x1x128xf32> to vector<1x128xf32>
    %85 = vector.broadcast %84 : vector<1x128xf32> to vector<32x128xf32>
    %86 = arith.addf %82, %85 : vector<32x128xf32>
    %87 = arith.addf %4, %86 : vector<32x128xf32>
    %cst_22 = arith.constant dense<0.000000e+00> : vector<32xf32>
    %88 = vector.multi_reduction <add>, %87, %cst_22 [1] : vector<32x128xf32> to vector<32xf32>
    %89 = vector.shape_cast %88 : vector<32xf32> to vector<32x1xf32>
    %cst_23 = arith.constant 1.280000e+02 : f32
    %90 = vector.broadcast %cst_23 : f32 to vector<32x1xf32>
    %91 = arith.divf %89, %90 : vector<32x1xf32>
    %92 = vector.broadcast %91 : vector<32x1xf32> to vector<32x128xf32>
    %93 = arith.subf %87, %92 : vector<32x128xf32>
    %94 = arith.mulf %93, %93 : vector<32x128xf32>
    %cst_24 = arith.constant dense<0.000000e+00> : vector<32xf32>
    %95 = vector.multi_reduction <add>, %94, %cst_24 [1] : vector<32x128xf32> to vector<32xf32>
    %96 = vector.shape_cast %95 : vector<32xf32> to vector<32x1xf32>
    %cst_25 = arith.constant 1.280000e+02 : f32
    %97 = vector.broadcast %cst_25 : f32 to vector<32x1xf32>
    %98 = arith.divf %96, %97 : vector<32x1xf32>
    %cst_26 = arith.constant 9.99999974E-6 : f32
    %99 = vector.broadcast %cst_26 : f32 to vector<32x1xf32>
    %100 = arith.addf %98, %99 : vector<32x1xf32>
    %101 = math.rsqrt %100 : vector<32x1xf32>
    %102 = vector.broadcast %101 : vector<32x1xf32> to vector<32x128xf32>
    %103 = arith.mulf %93, %102 : vector<32x128xf32>
    %c0_27 = arith.constant 0 : index
    %c0_28 = arith.constant 0 : index
    %c0_29 = arith.constant 0 : index
    %104 = vector.load %arg13[%c0_27, %c0_28, %c0_29] : memref<1x1x128xf32, #tpu.memory_space<vmem>>, vector<1x1x128xf32>
    %105 = vector.shape_cast %104 : vector<1x1x128xf32> to vector<1x128xf32>
    %106 = vector.broadcast %105 : vector<1x128xf32> to vector<32x128xf32>
    %107 = arith.mulf %103, %106 : vector<32x128xf32>
    %c0_30 = arith.constant 0 : index
    %c0_31 = arith.constant 0 : index
    %c0_32 = arith.constant 0 : index
    %108 = vector.load %arg14[%c0_30, %c0_31, %c0_32] : memref<1x1x128xf32, #tpu.memory_space<vmem>>, vector<1x1x128xf32>
    %109 = vector.shape_cast %108 : vector<1x1x128xf32> to vector<1x128xf32>
    %110 = vector.broadcast %109 : vector<1x128xf32> to vector<32x128xf32>
    %111 = arith.addf %107, %110 : vector<32x128xf32>
    %112 = arith.truncf %111 : vector<32x128xf32> to vector<32x128xbf16>
    %c0_33 = arith.constant 0 : index
    %c0_34 = arith.constant 0 : index
    %c0_35 = arith.constant 0 : index
    %113 = vector.load %arg9[%c0_33, %c0_34, %c0_35] : memref<1x128x256xbf16, #tpu.memory_space<vmem>>, vector<1x128x256xbf16>
    %114 = vector.shape_cast %113 : vector<1x128x256xbf16> to vector<128x256xbf16>
    %cst_36 = arith.constant dense<0.000000e+00> : vector<32x256xf32>
    %115 = tpu.matmul %112, %114, %cst_36 {dimension_numbers = #tpu.dot_dimension_numbers<[1], [0], [0], [1], [0, 0, 1, 1], [], []>} : vector<32x128xbf16>, vector<128x256xbf16>, vector<32x256xf32> -> vector<32x256xf32>
    %c0_37 = arith.constant 0 : index
    %c0_38 = arith.constant 0 : index
    %c0_39 = arith.constant 0 : index
    %116 = vector.load %arg10[%c0_37, %c0_38, %c0_39] : memref<1x1x256xf32, #tpu.memory_space<vmem>>, vector<1x1x256xf32>
    %117 = vector.shape_cast %116 : vector<1x1x256xf32> to vector<1x256xf32>
    %118 = vector.broadcast %117 : vector<1x256xf32> to vector<32x256xf32>
    %119 = arith.addf %115, %118 : vector<32x256xf32>
    %cst_40 = arith.constant 0.000000e+00 : f32
    %120 = vector.broadcast %cst_40 : f32 to vector<32x256xf32>
    %121 = arith.maximumf %119, %120 : vector<32x256xf32>
    %122 = arith.truncf %121 : vector<32x256xf32> to vector<32x256xbf16>
    %c0_41 = arith.constant 0 : index
    %c0_42 = arith.constant 0 : index
    %c0_43 = arith.constant 0 : index
    %123 = vector.load %arg11[%c0_41, %c0_42, %c0_43] : memref<1x256x128xbf16, #tpu.memory_space<vmem>>, vector<1x256x128xbf16>
    %124 = vector.shape_cast %123 : vector<1x256x128xbf16> to vector<256x128xbf16>
    %cst_44 = arith.constant dense<0.000000e+00> : vector<32x128xf32>
    %125 = tpu.matmul %122, %124, %cst_44 {dimension_numbers = #tpu.dot_dimension_numbers<[1], [0], [0], [1], [0, 0, 1, 1], [], []>} : vector<32x256xbf16>, vector<256x128xbf16>, vector<32x128xf32> -> vector<32x128xf32>
    %c0_45 = arith.constant 0 : index
    %c0_46 = arith.constant 0 : index
    %c0_47 = arith.constant 0 : index
    %126 = vector.load %arg12[%c0_45, %c0_46, %c0_47] : memref<1x1x128xf32, #tpu.memory_space<vmem>>, vector<1x1x128xf32>
    %127 = vector.shape_cast %126 : vector<1x1x128xf32> to vector<1x128xf32>
    %128 = vector.broadcast %127 : vector<1x128xf32> to vector<32x128xf32>
    %129 = arith.addf %125, %128 : vector<32x128xf32>
    %130 = arith.addf %111, %129 : vector<32x128xf32>
    %cst_48 = arith.constant dense<0.000000e+00> : vector<32xf32>
    %131 = vector.multi_reduction <add>, %130, %cst_48 [1] : vector<32x128xf32> to vector<32xf32>
    %132 = vector.shape_cast %131 : vector<32xf32> to vector<32x1xf32>
    %cst_49 = arith.constant 1.280000e+02 : f32
    %133 = vector.broadcast %cst_49 : f32 to vector<32x1xf32>
    %134 = arith.divf %132, %133 : vector<32x1xf32>
    %135 = vector.broadcast %134 : vector<32x1xf32> to vector<32x128xf32>
    %136 = arith.subf %130, %135 : vector<32x128xf32>
    %137 = arith.mulf %136, %136 : vector<32x128xf32>
    %cst_50 = arith.constant dense<0.000000e+00> : vector<32xf32>
    %138 = vector.multi_reduction <add>, %137, %cst_50 [1] : vector<32x128xf32> to vector<32xf32>
    %139 = vector.shape_cast %138 : vector<32xf32> to vector<32x1xf32>
    %cst_51 = arith.constant 1.280000e+02 : f32
    %140 = vector.broadcast %cst_51 : f32 to vector<32x1xf32>
    %141 = arith.divf %139, %140 : vector<32x1xf32>
    %cst_52 = arith.constant 9.99999974E-6 : f32
    %142 = vector.broadcast %cst_52 : f32 to vector<32x1xf32>
    %143 = arith.addf %141, %142 : vector<32x1xf32>
    %144 = math.rsqrt %143 : vector<32x1xf32>
    %145 = vector.broadcast %144 : vector<32x1xf32> to vector<32x128xf32>
    %146 = arith.mulf %136, %145 : vector<32x128xf32>
    %c0_53 = arith.constant 0 : index
    %c0_54 = arith.constant 0 : index
    %c0_55 = arith.constant 0 : index
    %147 = vector.load %arg15[%c0_53, %c0_54, %c0_55] : memref<1x1x128xf32, #tpu.memory_space<vmem>>, vector<1x1x128xf32>
    %148 = vector.shape_cast %147 : vector<1x1x128xf32> to vector<1x128xf32>
    %149 = vector.broadcast %148 : vector<1x128xf32> to vector<32x128xf32>
    %150 = arith.mulf %146, %149 : vector<32x128xf32>
    %c0_56 = arith.constant 0 : index
    %c0_57 = arith.constant 0 : index
    %c0_58 = arith.constant 0 : index
    %151 = vector.load %arg16[%c0_56, %c0_57, %c0_58] : memref<1x1x128xf32, #tpu.memory_space<vmem>>, vector<1x1x128xf32>
    %152 = vector.shape_cast %151 : vector<1x1x128xf32> to vector<1x128xf32>
    %153 = vector.broadcast %152 : vector<1x128xf32> to vector<32x128xf32>
    %154 = arith.addf %150, %153 : vector<32x128xf32>
    %155 = vector.shape_cast %154 : vector<32x128xf32> to vector<2x16x128xf32>
    %c0_59 = arith.constant 0 : index
    %c0_60 = arith.constant 0 : index
    %c0_61 = arith.constant 0 : index
    %156 = vector.load %arg17[%c0_59, %c0_60, %c0_61] : memref<2x16x128xf32, #tpu.memory_space<vmem>>, vector<2x16x128xf32>
    tpu.vector_store %arg17[%c0_59, %c0_60, %c0_61], %155 {strides = array<i32>} : memref<2x16x128xf32, #tpu.memory_space<vmem>>, vector<2x16x128xf32>,
    return
  }
  func.func @transform_0(%arg0: i32, %arg1: i32) -> (i32, i32, i32) {
    %c0_i32 = arith.constant 0 : i32
    %c0_i32_0 = arith.constant 0 : i32
    %c0_i32_1 = arith.constant 0 : i32
    return %arg0, %c0_i32, %c0_i32_0 : i32, i32, i32
  }
  func.func @transform_1(%arg0: i32, %arg1: i32) -> (i32, i32) {
    %c0_i32 = arith.constant 0 : i32
    %c0_i32_0 = arith.constant 0 : i32
    %c0_i32_1 = arith.constant 0 : i32
    return %c0_i32, %c0_i32_0 : i32, i32
  }
  func.func @transform_2(%arg0: i32, %arg1: i32) -> (i32, i32) {
    %c0_i32 = arith.constant 0 : i32
    %c0_i32_0 = arith.constant 0 : i32
    %c0_i32_1 = arith.constant 0 : i32
    return %c0_i32, %c0_i32_0 : i32, i32
  }
  func.func @transform_3(%arg0: i32, %arg1: i32) -> (i32, i32, i32) {
    %c0_i32 = arith.constant 0 : i32
    %c0_i32_0 = arith.constant 0 : i32
    %c0_i32_1 = arith.constant 0 : i32
    return %arg1, %c0_i32, %c0_i32_0 : i32, i32, i32
  }
  func.func @transform_4(%arg0: i32, %arg1: i32) -> (i32, i32, i32) {
    %c0_i32 = arith.constant 0 : i32
    %c0_i32_0 = arith.constant 0 : i32
    %c0_i32_1 = arith.constant 0 : i32
    return %arg1, %c0_i32, %c0_i32_0 : i32, i32, i32
  }
  func.func @transform_5(%arg0: i32, %arg1: i32) -> (i32, i32, i32) {
    %c0_i32 = arith.constant 0 : i32
    %c0_i32_0 = arith.constant 0 : i32
    %c0_i32_1 = arith.constant 0 : i32
    return %arg1, %c0_i32, %c0_i32_0 : i32, i32, i32
  }
  func.func @transform_6(%arg0: i32, %arg1: i32) -> (i32, i32, i32) {
    %c0_i32 = arith.constant 0 : i32
    %c0_i32_0 = arith.constant 0 : i32
    %c0_i32_1 = arith.constant 0 : i32
    return %arg1, %c0_i32, %c0_i32_0 : i32, i32, i32
  }
  func.func @transform_7(%arg0: i32, %arg1: i32) -> (i32, i32, i32) {
    %c0_i32 = arith.constant 0 : i32
    %c0_i32_0 = arith.constant 0 : i32
    %c0_i32_1 = arith.constant 0 : i32
    return %arg1, %c0_i32, %c0_i32_0 : i32, i32, i32
  }
  func.func @transform_8(%arg0: i32, %arg1: i32) -> (i32, i32, i32) {
    %c0_i32 = arith.constant 0 : i32
    %c0_i32_0 = arith.constant 0 : i32
    %c0_i32_1 = arith.constant 0 : i32
    return %arg1, %c0_i32, %c0_i32_0 : i32, i32, i32
  }
  func.func @transform_9(%arg0: i32, %arg1: i32) -> (i32, i32, i32) {
    %c0_i32 = arith.constant 0 : i32
    %c0_i32_0 = arith.constant 0 : i32
    %c0_i32_1 = arith.constant 0 : i32
    return %arg1, %c0_i32, %c0_i32_0 : i32, i32, i32
  }
  func.func @transform_10(%arg0: i32, %arg1: i32) -> (i32, i32, i32) {
    %c0_i32 = arith.constant 0 : i32
    %c0_i32_0 = arith.constant 0 : i32
    %c0_i32_1 = arith.constant 0 : i32
    return %arg1, %c0_i32, %c0_i32_0 : i32, i32, i32
  }
  func.func @transform_11(%arg0: i32, %arg1: i32) -> (i32, i32, i32) {
    %c0_i32 = arith.constant 0 : i32
    %c0_i32_0 = arith.constant 0 : i32
    %c0_i32_1 = arith.constant 0 : i32
    return %arg1, %c0_i32, %c0_i32_0 : i32, i32, i32
  }
  func.func @transform_12(%arg0: i32, %arg1: i32) -> (i32, i32, i32) {
    %c0_i32 = arith.constant 0 : i32
    %c0_i32_0 = arith.constant 0 : i32
    %c0_i32_1 = arith.constant 0 : i32
    return %arg1, %c0_i32, %c0_i32_0 : i32, i32, i32
  }
  func.func @transform_13(%arg0: i32, %arg1: i32) -> (i32, i32, i32) {
    %c0_i32 = arith.constant 0 : i32
    %c0_i32_0 = arith.constant 0 : i32
    %c0_i32_1 = arith.constant 0 : i32
    return %arg1, %c0_i32, %c0_i32_0 : i32, i32, i32
  }
  func.func @transform_14(%arg0: i32, %arg1: i32) -> (i32, i32, i32) {
    %c0_i32 = arith.constant 0 : i32
    %c0_i32_0 = arith.constant 0 : i32
    %c0_i32_1 = arith.constant 0 : i32
    return %arg1, %c0_i32, %c0_i32_0 : i32, i32, i32
  }
  func.func @transform_15(%arg0: i32, %arg1: i32) -> (i32, i32, i32) {
    %c0_i32 = arith.constant 0 : i32
    %c0_i32_0 = arith.constant 0 : i32
    %c0_i32_1 = arith.constant 0 : i32
    return %arg0, %c0_i32, %c0_i32_0 : i32, i32, i32
  }
}

</mosaic_0001>

<bundles_post_ra>
// kernel: tpu_custom_call.1
= control target key start
LH: loop header
LB: loop body
LE: loop exit
PB: predicated region body
PF: predicated region fallthrough
CT: control target
= control target key end

     0   :  { %s5200_s0 = inlined_call_operand.hbm [shape: f32[4,16,128], index: 0, kind: input, shape index: {}]   ;;  %s5201_s1 = inlined_call_operand.hbm [shape: f32[16,128], index: 1, kind: input, shape index: {}]   ;;  %s5202_s2 = inlined_call_operand.hbm [shape: bf16[16,16], index: 2, kind: input, shape index: {}]   ;;  %s5203_s3 = inlined_call_operand.hbm [shape: bf16[2,128,384], index: 3, kind: input, shape index: {}]   ;;  %s5204_s4 = inlined_call_operand.vmem [shape: f32[2,1,384], index: 4, kind: input, shape index: {}]   ;;  %s5205_s5 = inlined_call_operand.hbm [shape: bf16[2,128,128], index: 5, kind: input, shape index: {}]   ;;  %s5206_s6 = inlined_call_operand.vmem [shape: f32[2,1,128], index: 6, kind: input, shape index: {}]   ;;  %s5207_s7 = inlined_call_operand.hbm [shape: bf16[2,128,256], index: 7, kind: input, shape index: {}]   ;;  %s5208_s8 = inlined_call_operand.vmem [shape: f32[2,1,256], index: 8, kind: input, shape index: {}]   ;;  %s5209_s9 = inlined_call_operand.hbm [shape: bf16[2,256,128], index: 9, kind: input, shape index: {}]   ;;  %s5210_s10 = inlined_call_operand.vmem [shape: f32[2,1,128], index: 10, kind: input, shape index: {}]   ;;  %s5211_s11 = inlined_call_operand.vmem [shape: f32[2,1,128], index: 11, kind: input, shape index: {}]   ;;  %s5212_s12 = inlined_call_operand.vmem [shape: f32[2,1,128], index: 12, kind: input, shape index: {}]   ;;  %s5213_s13 = inlined_call_operand.vmem [shape: f32[2,1,128], index: 13, kind: input, shape index: {}]   ;;  %s5214_s14 = inlined_call_operand.vmem [shape: f32[2,1,128], index: 14, kind: input, shape index: {}]   ;;  %s5215_s15 = inlined_call_operand.hbm [shape: f32[4,16,128], index: 15, kind: output, shape index: {}]  }
   0x1   :  { %5263 = sst [smem:[#allocation39_spill]] %s5200_s0 }
   0x2   :  { %5264 = sst [smem:[#allocation40_spill]] %s5201_s1 }
   0x3   :  { %5265 = sst [smem:[#allocation41_spill]] %s5202_s2 }
   0x4   :  { %5266 = sst [smem:[#allocation42_spill]] %s5203_s3 }
   0x5   :  { %5267 = sst [smem:[#allocation43_spill]] %s5204_s4 }
   0x6   :  { %5268 = sst [smem:[#allocation44_spill]] %s5205_s5 }
   0x7   :  { %5269 = sst [smem:[#allocation45_spill]] %s5206_s6 }
   0x8   :  { %5270 = sst [smem:[#allocation46_spill]] %s5207_s7 }
   0x9   :  { %5271 = sst [smem:[#allocation47_spill]] %s5208_s8 }
   0xa   :  { %5272 = sst [smem:[#allocation48_spill]] %s5209_s9 }
   0xb   :  { %5273 = sst [smem:[#allocation49_spill]] %s5210_s10 }
   0xc   :  { %5274 = sst [smem:[#allocation50_spill]] %s5211_s11 }
   0xd   :  { %5275 = sst [smem:[#allocation51_spill]] %s5212_s12 }
   0xe   :  { %5276 = sst [smem:[#allocation52_spill]] %s5213_s13 }
   0xf   :  { %5277 = sst [smem:[#allocation53_spill]] %s5214_s14 }
  0x10   :  { %5278 = sst [smem:[#allocation54_spill]] %s5215_s15 }
  0x11   :  { %20 = vsyncpa [#allocation3], 0 }
  0x12   :  { %22 = vsyncpa [#allocation3 + $0x1], 0 }
  0x13   :  { %23 = vsyncpa [#allocation6], 0 }
  0x14   :  { %24 = vsyncpa [#allocation9], 0 }
  0x15   :  { %26 = vsyncpa [#allocation9 + $0x1], 0 }
  0x16   :  { %27 = vsyncpa [#allocation12], 0 }
  0x17   :  { %29 = vsyncpa [#allocation12 + $0x1], 0 }
  0x18   :  { %30 = vsyncpa [#allocation4], 0 }
  0x19   :  { %32 = vsyncpa [#allocation4 + $0x1], 0  ;;  %s4227_s18 = smov 0   ;;  %s4229_s19 = smov 0  }
  0x1a   :  { %s4231_s20 = smov 0   ;;  %s4233_s21 = smov 0  }
  0x1b   :  { %s4235_s22 = smov 0   ;;  %s4237_s23 = smov 0  }
  0x1c   :  { %s4239_s24 = smov 0   ;;  %s4241_s25 = smov 0  }
  0x1d   :  { %s4243_s26 = smov 0   ;;  %s4245_s27 = smov 0  }
  0x1e   :  { %s4247_s28 = smov 0  }
  0x1f LB: > { %5279 = sst [smem:[#allocation20_spill]] %s4087_s19  ;;  %s4281_s29 = sadd.s32 4294967295, %s4123_s28   ;;  %s4123_s28 = sphi %s4247_s28, %s38_s28   ;;  %s4119_s27 = sphi %s4245_s27, %s5378_s27   ;;  %s4115_s26 = sphi %s4243_s26, %s5377_s26   ;;  %s4111_s25 = sphi %s4241_s25, %s5376_s25   ;;  %s4107_s24 = sphi %s4239_s24, %s5375_s24   ;;  %s4103_s23 = sphi %s4237_s23, %s5374_s23   ;;  %s4099_s22 = sphi %s4235_s22, %s5373_s22   ;;  %s4095_s21 = sphi %s4233_s21, %s5372_s21   ;;  %s4091_s20 = sphi %s4231_s20, %s5371_s20   ;;  %s4087_s19 = sphi %s4229_s19, %s5370_s19   ;;  %s4083_s18 = sphi %s4227_s18, %s5369_s18  }
  0x20   : > { %5280 = sst [smem:[#allocation21_spill]] %s4091_s20  ;;  %s3080_s30 = sadd.s32 4294967294, %s4123_s28  }
  0x21   : > { %5281 = sst [smem:[#allocation22_spill]] %s4095_s21  ;;  %p70_p0 = scmp.ne.s32.totalorder %s4099_s22, %s4095_s21 }
  0x22   : > { %5282 = sst [smem:[#allocation23_spill]] %s4099_s22  ;;  %p5219_p1 = scmp.eq.s32.totalorder %s4281_s29, 0 }
  0x23   : > { %5283 = sst [smem:[#allocation24_spill]] %s4103_s23  ;;  %p138_p2 = scmp.ne.s32.totalorder %s4087_s19, %s4083_s18 }
  0x24   : > { %5284 = sst [smem:[#allocation25_spill]] %s4107_s24  ;;  %p4291_p4 = por %p5219_p1, %p70_p0 }
  0x25   : > { %5285 = sst [smem:[#allocation26_spill]] %s4111_s25  ;;  %p454_p5 = scmp.eq.s32.totalorder %s3080_s30, 3 }
  0x26   : > { %5286 = sst [smem:[#allocation27_spill]] %s4115_s26  ;;  %p4297_p6 = por %p138_p2, %p5219_p1 }
  0x27   : > { %5287 = sst [smem:[#allocation28_spill]] %s4119_s27  ;;  %p3081_p7 = scmp.ge.s32.totalorder %s4123_s28, 1 }
  0x28   : > { %5288 = sst [smem:[#allocation29_spill]] %s4123_s28  ;;  %p4302_p8 = por %p454_p5, %p70_p0 }
  0x29   : > { %s5289_s16 = scalar_select %p4291_p4, 1, 0 }
  0x2a   : > { %s5291_s17 = scalar_select %p4297_p6, 1, 0 }
  0x2b   : > { %5290 = sst [smem:[#allocation30_spill]] %s5289_s16  ;;  %p461_p9 = scmp.lt.s32.totalorder %s4123_s28, 5 }
  0x2c   : > { %5292 = sst [smem:[#allocation31_spill]] %s5291_s17  ;;  %s4125_s21 = smov [#allocation5]  }
  0x2d   : > { %s5293_s15 = scalar_select %p4302_p8, 1, 0 }
  0x2e   : > { %p4307_p10 = pnand %p3081_p7, %p461_p9  ;;  %s473_s25 = sshll.u32 %s4125_s21, 4  ;;  %s474_s25 = int_to_ptr.vmem [resolvable:$true] %s473_s25 }
  0x2f   : > { %5294 = sst [smem:[#allocation32_spill]] %s5293_s15  ;;  %s47_s14 = sadd.s32 1, %s4115_s26 }
  0x30   : > { %s5295_s18 = scalar_select %p4307_p10, 1, 0 }
  0x31   : > { %p3452_p11 = pneg %p4307_p10  ;;  %s5298_s1 = sld [smem:[#allocation40_spill]] }
  0x32   : > { %5296 = sst [smem:[#allocation33_spill]] %s5295_s18 }
  0x33   : > { %p4315_p12 = pnand %p3452_p11, %p5219_p1 }
  0x35   : > { %s5297_s30 = scalar_select %p4315_p12, 1, 0 }
  0x36   : > { %p5232_p0 = pneg %p4315_p12 }
  0x37   : > { %s3783_s12 = scalar_lea.hbm %s5298_s1, 256 }
  0x38   : > { %p3784_p13 = scmp.ne.s32.totalorder %s5298_s1, %s3783_s12  ;;  %p3790_p7 = scmp.lt.u32.totalorder %s3783_s12, %s5298_s1 }
  0x3a   : > { %p3786_p2 = pnand %p5232_p0, %p3784_p13 }
  0x3c   : > { %p3787_p5 = pneg %p3786_p2 }
  0x3e   : > { %p3792_p9 = pnand %p3790_p7, %p3787_p5 }
  0x40   : > { %3795 = shalt.err (!%p3792_p9)
}
  0x41   : > { %s3796_s10 = scalar_lea.vmem %s474_s25, 256  ;;  %p3804_p8 = scmp.lt.s32.totalorder %s474_s25, %s474_s25 }
  0x42   : > { %p3797_p11 = scmp.ne.s32.totalorder %s474_s25, %s3796_s10  ;;  %p3805_p6 = scmp.lt.s32.totalorder %s3796_s10, %s3796_s10 }
  0x44   : > { %p3799_p1 = pnand %p3797_p11, %p5232_p0  ;;  %p3806_p4 = por %p3805_p6, %p3804_p8 }
  0x46   : > { %p3800_p3 = pneg %p3799_p1 }
  0x48   : > { %p3807_p10 = pnand %p3806_p4, %p3800_p3 }
  0x4a   : > { %3810 = shalt.err (!%p3807_p10)
}
  0x4b   : > { %s5223_s8 = smov 128   ;;  %s5225_s4 = smov 8  }
  0x4c   : > { %3455 = dma.hbm_to_vmem [thread:$0]  (!%p4315_p12), %s5298_s1, 256, %s474_s25, [#allocation6], %s5223_s8, %s5223_s8, %s5225_s4  }
  0x4d   : > { %p4345_p1 = scmp.ge.s32.totalorder %s47_s14, 2  ;;  %p5231_p3 = scmp.eq.s32.totalorder %s4123_s28, 0 }
  0x4e   : > { %s125_s13 = sadd.s32 1, %s4091_s20  ;;  %p132_p4 = scmp.ne.s32.totalorder %s4091_s20, %s4087_s19 }
  0x4f   : > { %s5299_s12 = scalar_select %p4345_p1, 1, 0 }
  0x50   : > { %s5380_s14 = smov (%p4345_p1, %s47_s14), 0  ;;  %p134_p6 = por %p132_p4, %p5231_p3 }
  0x51   : > { %5300 = sst [smem:[#allocation34_spill]] %s5380_s14  ;;  %p5230_p8 = scmp.lt.s32.totalorder %s4123_s28, 4 }
  0x52   : > { %s122_s15 = ssub.s32 %s4115_s26, %s5380_s14  ;;  %s4364_s25 = sand.u32 1, %s4091_s20  }
  0x53   : > { %p123_p10 = scmp.eq.s32.totalorder %s122_s15, 0  ;;  %s3429_s10 = smul.u32 3072, %s4115_s26 }
  0x54   : > { %s3428_s8 = smul.u32 192, %s4364_s25  ;;  %s5302_s3 = sld [smem:[#allocation42_spill]] }
  0x55   : > { %s4368_s11 = scalar_select %p123_p10, %s4091_s20, %s125_s13  }
  0x56   : > { %p4378_p13 = pnand %p5230_p8, %p134_p6  ;;  %s526_s15 = scalar_lea.vmem [#allocation8], %s3428_s8 }
  0x57   : > { %5301 = sst [smem:[#allocation35_spill]] %s4368_s11  ;;  %s533_s14 = sshll.u32 %s526_s15, 4  ;;  %s4382_s14 = int_to_ptr.vmem [resolvable:$true] %s533_s14 }
  0x58   : > { %s5303_s21 = scalar_select %p4378_p13, 1, 0 }
  0x59   : > { %s5304_s13 = sand.u32 1, %s4123_s28   ;;  %p4392_p5 = pneg %p4378_p13 }
  0x5a   : > { %s4374_s6 = scalar_lea.hbm %s5302_s3, %s3429_s10  ;;  %s4386_s11 = scalar_lea.sflag [#allocation9], %s5304_s13 }
  0x5b   : > { %s3811_s1 = scalar_lea.hbm %s4374_s6, 3072  ;;  %s3816_s8 = scalar_lea.hbm %s5302_s3, 6144 }
  0x5c   : > { %p3812_p2 = scmp.ne.s32.totalorder %s4374_s6, %s3811_s1  ;;  %p3817_p11 = scmp.lt.u32.totalorder %s4374_s6, %s5302_s3 }
  0x5d   : > { %s5305_s4 = scalar_select %p4392_p5, 1, 0 }
  0x5e   : > { %p3814_p7 = pnand %p4392_p5, %p3812_p2  ;;  %p3818_p4 = scmp.lt.u32.totalorder %s3816_s8, %s3811_s1 }
  0x5f   : > { %p3820_p10 = scmp.lt.u32.totalorder %s3811_s1, %s4374_s6 }
  0x60   : > { %p3815_p9 = pneg %p3814_p7  ;;  %p3819_p6 = por %p3818_p4, %p3817_p11 }
  0x62   : > { %p3821_p8 = por %p3820_p10, %p3819_p6 }
  0x64   : > { %p3822_p3 = pnand %p3821_p8, %p3815_p9 }
  0x66   : > { %3825 = shalt.err (!%p3822_p3)
}
  0x67   : > { %s3826_s13 = scalar_lea.vmem %s4382_s14, 3072  ;;  %s4128_s20 = smov [#allocation8]  }
  0x68   : > { %p3827_p2 = scmp.ne.s32.totalorder %s4382_s14, %s3826_s13  ;;  %s3831_s10 = sshll.u32 %s4128_s20, 4  ;;  %s3832_s10 = int_to_ptr.vmem [resolvable:$false] %s3831_s10 }
  0x69   : > { %s3833_s24 = scalar_lea.vmem %s3832_s10, 6144  ;;  %p3834_p1 = scmp.lt.s32.totalorder %s4382_s14, %s3832_s10 }
  0x6a   : > { %p3829_p7 = pnand %p3827_p2, %p4392_p5  ;;  %p3835_p12 = scmp.lt.s32.totalorder %s3833_s24, %s3826_s13 }
  0x6c   : > { %p3830_p0 = pneg %p3829_p7  ;;  %p3836_p11 = por %p3835_p12, %p3834_p1 }
  0x6e   : > { %p3837_p4 = pnand %p3836_p11, %p3830_p0 }
  0x70   : > { %3840 = shalt.err (!%p3837_p4)
}
  0x71   : > { %s4129_s1 = smov 192   ;;  %s4130_s8 = smov 12  }
  0x72   : > { %3465 = dma.hbm_to_vmem [thread:$0]  (!%p4378_p13), %s4374_s6, 3072, %s4382_s14, %s4386_s11, %s4129_s1, %s4129_s1, %s4130_s8  }
  0x73   : > { %s5241_s15 = sshll.u32 %s4364_s25, 7  ;;  %s3204_s20 = sshll.u32 %s4115_s26, 11 }
  0x74   : > { %s5306_s7 = sld [smem:[#allocation46_spill]]  ;;  %s581_s3 = scalar_lea.vmem [#allocation11], %s5241_s15 }
  0x75   : > { %s588_s17 = sshll.u32 %s581_s3, 4  ;;  %s5307_s9 = sld [smem:[#allocation48_spill]]  ;;  %s4425_s17 = int_to_ptr.vmem [resolvable:$true] %s588_s17 }
  0x76   : > { %s5308_s14 = sand.u32 1, %s4123_s28  }
  0x77   : > { %s4434_s1 = scalar_lea.sflag [#allocation12], %s5308_s14 }
  0x7a   : > { %s4421_s24 = scalar_lea.hbm %s5306_s7, %s3204_s20  ;;  %s3846_s15 = scalar_lea.hbm %s5306_s7, 4096 }
  0x7b   : > { %s4430_s6 = scalar_lea.hbm %s5307_s9, %s3204_s20  ;;  %s3841_s8 = scalar_lea.hbm %s4421_s24, 2048 }
  0x7c   : > { %p3842_p12 = scmp.ne.s32.totalorder %s4421_s24, %s3841_s8  ;;  %p3847_p3 = scmp.lt.u32.totalorder %s4421_s24, %s5306_s7 }
  0x7d   : > { %p3848_p8 = scmp.lt.u32.totalorder %s3846_s15, %s3841_s8  ;;  %p3850_p6 = scmp.lt.u32.totalorder %s3841_s8, %s4421_s24 }
  0x7e   : > { %p3844_p0 = pnand %p3842_p12, %p4392_p5 }
  0x7f   : > { %p3849_p9 = por %p3848_p8, %p3847_p3 }
  0x80   : > { %p3845_p1 = pneg %p3844_p0 }
  0x81   : > { %p3851_p10 = por %p3850_p6, %p3849_p9 }
  0x83   : > { %p3852_p2 = pnand %p3851_p10, %p3845_p1 }
  0x85   : > { %3855 = shalt.err (!%p3852_p2)
}
  0x86   : > { %s3856_s19 = scalar_lea.vmem %s4425_s17, 2048  ;;  %s4131_s16 = smov [#allocation11]  }
  0x87   : > { %p3857_p7 = scmp.ne.s32.totalorder %s4425_s17, %s3856_s19  ;;  %s3861_s20 = sshll.u32 %s4131_s16, 4  ;;  %s3862_s20 = int_to_ptr.vmem [resolvable:$false] %s3861_s20 }
  0x88   : > { %s3863_s18 = scalar_lea.vmem %s3862_s20, 4096  ;;  %p3864_p12 = scmp.lt.s32.totalorder %s4425_s17, %s3862_s20 }
  0x89   : > { %p3859_p11 = pnand %p3857_p7, %p4392_p5  ;;  %p3865_p0 = scmp.lt.s32.totalorder %s3863_s18, %s3856_s19 }
  0x8b   : > { %p3860_p4 = pneg %p3859_p11  ;;  %p3866_p3 = por %p3865_p0, %p3864_p12 }
  0x8d   : > { %p3867_p8 = pnand %p3866_p3, %p3860_p4 }
  0x8f   : > { %3870 = shalt.err (!%p3867_p8)
}
  0x90   : > { %s5309_s15 = smov 8   ;;  %s5310_s14 = smov 128  }
  0x91   : > { %3471 = dma.hbm_to_vmem [thread:$0]  (!%p4378_p13), %s4421_s24, 2048, %s4425_s17, %s4434_s1, %s5310_s14, %s5310_s14, %s5309_s15  }
  0x92   : > { %s5311_s8 = sshll.u32 %s4364_s25, 7  ;;  %s4132_s3 = smov [#allocation7]  }
  0x93   : > { %s609_s10 = scalar_lea.vmem [#allocation13], %s5311_s8  ;;  %s486_s19 = sshll.u32 %s4132_s3, 4  ;;  %s487_s19 = int_to_ptr.vmem [resolvable:$true] %s486_s19 }
  0x94   : > { %s616_s13 = sshll.u32 %s609_s10, 4  ;;  %s5312_s2 = sld [smem:[#allocation41_spill]]  ;;  %s4463_s13 = int_to_ptr.vmem [resolvable:$true] %s616_s13 }
  0x95   : > { %p5313_p9 = scmp.ne.s32.totalorder %s5297_s30, 0 }
  0x97   : > { %p5314_p6 = pneg %p5313_p9 }
  0x9a   : > { %s3871_s18 = scalar_lea.hbm %s5312_s2, 128 }
  0x9b   : > { %p3872_p1 = scmp.ne.s32.totalorder %s5312_s2, %s3871_s18  ;;  %p3878_p7 = scmp.lt.u32.totalorder %s3871_s18, %s5312_s2 }
  0x9d   : > { %p3874_p10 = pnand %p3872_p1, %p5314_p6 }
  0x9f   : > { %p3875_p2 = pneg %p3874_p10 }
  0xa1   : > { %p3880_p11 = pnand %p3878_p7, %p3875_p2 }
  0xa3   : > { %3883 = shalt.err (!%p3880_p11)
}
  0xa4   : > { %s3884_s8 = scalar_lea.vmem %s487_s19, 128  ;;  %p5315_p12 = pmov %p5314_p6 }
  0xa5   : > { %p3885_p4 = scmp.ne.s32.totalorder %s487_s19, %s3884_s8  ;;  %p3892_p8 = scmp.lt.s32.totalorder %s487_s19, %s487_s19 }
  0xa6   : > { %p3893_p13 = scmp.lt.s32.totalorder %s3884_s8, %s3884_s8 }
  0xa7   : > { %p3887_p0 = pnand %p3885_p4, %p5315_p12 }
  0xa8   : > { %p3894_p5 = por %p3893_p13, %p3892_p8 }
  0xa9   : > { %p3888_p3 = pneg %p3887_p0 }
  0xab   : > { %p3895_p1 = pnand %p3894_p5, %p3888_p3 }
  0xad   : > { %3898 = shalt.err (!%p3895_p1)
}
  0xae   : > { %s5248_s7 = smov 64   ;;  %s5250_s9 = smov 4  }
  0xaf   : > { %3458 = dma.hbm_to_vmem [thread:$0]  (!%p5313_p9), %s5312_s2, 128, %s487_s19, [#allocation6], %s5248_s7, %s5248_s7, %s5250_s9  }
  0xb0   : > { %s57_s16 = sadd.s32 1, %s4103_s23  ;;  %s50_s20 = sadd.s32 1, %s4119_s27 }
  0xb1   : > { %p64_p13 = scmp.ne.s32.totalorder %s4103_s23, %s4099_s22  ;;  %p5316_p5 = scmp.ne.s32.totalorder %s5299_s12, 0 }
  0xb2   : > { %p5317_p6 = scmp.eq.s32.totalorder %s4123_s28, 0  ;;  %p5319_p2 = scmp.eq.s32.totalorder %s4281_s29, 3 }
  0xb3   : > { %s5382_s20 = smov (!%p5316_p5, %s50_s20), %s4119_s27  ;;  %s500_s19 = sand.u32 1, %s4103_s23  }
  0xb4   : > { %p4497_p10 = por %p5317_p6, %p64_p13  ;;  %p4503_p7 = por %p5319_p2, %p64_p13 }
  0xb5   : > { %p52_p9 = scmp.ge.s32.totalorder %s5382_s20, 2  ;;  %s3085_s17 = sshll.u32 %s500_s19, 5 }
  0xb6   : > { %s5320_s30 = scalar_select %p4503_p7, 1, 0 }
  0xb7   : > { %s5384_s20 = smov (%p52_p9, %s5382_s20), 0  ;;  %s3202_s12 = sshll.u32 %s4119_s27, 9 }
  0xb8   : > { %5321 = sst [smem:[#allocation36_spill]] %s5320_s30  ;;  %s54_s24 = ssub.s32 %s4119_s27, %s5384_s20 }
  0xb9   : > { %5322 = sst [smem:[#allocation37_spill]] %s5384_s20  ;;  %p55_p11 = scmp.eq.s32.totalorder %s54_s24, 0 }
  0xba   : > { %s5323_s0 = sld [smem:[#allocation39_spill]]  ;;  %s504_s7 = scalar_lea.vmem [#allocation2], %s3085_s17 }
  0xbb   : > { %s512_s9 = sshll.u32 %s504_s7, 4  ;;  %p5324_p4 = scmp.lt.s32.totalorder %s4123_s28, 4  ;;  %s4518_s9 = int_to_ptr.vmem [resolvable:$true] %s512_s9 }
  0xbc   : > { %s4529_s8 = scalar_select %p55_p11, %s4103_s23, %s57_s16  }
  0xbd   : > { %p4524_p12 = pnand %p5324_p4, %p4497_p10  ;;  %s4532_s10 = scalar_lea.sflag [#allocation3], %s500_s19 }
  0xbe   : > { %5326 = sst [smem:[#allocation38_spill]] %s4529_s8 }
  0xbf   : > { %p3901_p3 = pneg %p4524_p12 }
  0xc0   : > { %s4516_s3 = scalar_lea.hbm %s5323_s0, %s3202_s12  ;;  %s3090_s12 = sshll.u32 %s4364_s25, 6 }
  0xc1   : > { %s3899_s20 = scalar_lea.hbm %s4516_s3, 512  ;;  %s3904_s17 = scalar_lea.hbm %s5323_s0, 1024 }
  0xc2   : > { %p3900_p0 = scmp.ne.s32.totalorder %s4516_s3, %s3899_s20  ;;  %p3905_p13 = scmp.lt.u32.totalorder %s4516_s3, %s5323_s0 }
  0xc3   : > { %p3906_p5 = scmp.lt.u32.totalorder %s3904_s17, %s3899_s20  ;;  %p3908_p10 = scmp.lt.u32.totalorder %s3899_s20, %s4516_s3 }
  0xc4   : > { %p3902_p8 = pnand %p3901_p3, %p3900_p0 }
  0xc5   : > { %p3907_p6 = por %p3906_p5, %p3905_p13 }
  0xc6   : > { %p3903_p1 = pneg %p3902_p8 }
  0xc7   : > { %p3909_p2 = por %p3908_p10, %p3907_p6 }
  0xc9   : > { %p3910_p9 = pnand %p3909_p2, %p3903_p1 }
  0xcb   : > { %3913 = shalt.err (!%p3910_p9)
}
  0xcc   : > { %s3914_s16 = scalar_lea.vmem %s4518_s9, 512  ;;  %s4135_s19 = smov [#allocation2]  }
  0xcd   : > { %p3915_p11 = scmp.ne.s32.totalorder %s4518_s9, %s3914_s16  ;;  %s3919_s7 = sshll.u32 %s4135_s19, 4  ;;  %s3920_s7 = int_to_ptr.vmem [resolvable:$false] %s3919_s7 }
  0xce   : > { %s3921_s27 = scalar_lea.vmem %s3920_s7, 1024  ;;  %p3922_p8 = scmp.lt.s32.totalorder %s4518_s9, %s3920_s7 }
  0xcf   : > { %p3917_p4 = pnand %p3915_p11, %p3901_p3  ;;  %p3923_p13 = scmp.lt.s32.totalorder %s3921_s27, %s3914_s16 }
  0xd1   : > { %p3918_p0 = pneg %p3917_p4  ;;  %p3924_p5 = por %p3923_p13, %p3922_p8 }
  0xd3   : > { %p3925_p6 = pnand %p3924_p5, %p3918_p0 }
  0xd5   : > { %3928 = shalt.err (!%p3925_p6)
}
  0xd6   : > { %3462 = dma.hbm_to_vmem [thread:$0]  (!%p4524_p12), %s4516_s3, 512, %s4518_s9, %s4532_s10, %s5310_s14, %s5310_s14, %s5309_s15  }
  0xd7   : > { %s3203_s20 = sshll.u32 %s4115_s26, 10  ;;  %s5327_s5 = sld [smem:[#allocation44_spill]] }
  0xd8   : > { %s554_s2 = scalar_lea.vmem [#allocation10], %s3090_s12  ;;  %p5328_p1 = scmp.ne.s32.totalorder %s5305_s4, 0 }
  0xd9   : > { %s561_s16 = sshll.u32 %s554_s2, 4  ;;  %s4571_s16 = int_to_ptr.vmem [resolvable:$true] %s561_s16 }
  0xdd   : > { %s4567_s24 = scalar_lea.hbm %s5327_s5, %s3203_s20  ;;  %s3934_s9 = scalar_lea.hbm %s5327_s5, 2048 }
  0xde   : > { %s3929_s19 = scalar_lea.hbm %s4567_s24, 1024  ;;  %p3935_p2 = scmp.lt.u32.totalorder %s4567_s24, %s5327_s5 }
  0xdf   : > { %p3930_p3 = scmp.ne.s32.totalorder %s4567_s24, %s3929_s19  ;;  %p3936_p9 = scmp.lt.u32.totalorder %s3934_s9, %s3929_s19 }
  0xe0   : > { %p3938_p4 = scmp.lt.u32.totalorder %s3929_s19, %s4567_s24 }
  0xe1   : > { %p3932_p10 = pnand %p3930_p3, %p5328_p1  ;;  %p3937_p11 = por %p3936_p9, %p3935_p2 }
  0xe3   : > { %p3933_p12 = pneg %p3932_p10  ;;  %p3939_p0 = por %p3938_p4, %p3937_p11 }
  0xe5   : > { %p3940_p8 = pnand %p3939_p0, %p3933_p12 }
  0xe7   : > { %3943 = shalt.err (!%p3940_p8)
}
  0xe8   : > { %s3944_s25 = scalar_lea.vmem %s4571_s16, 1024  ;;  %s4136_s12 = smov [#allocation10]  }
  0xe9   : > { %p3945_p13 = scmp.ne.s32.totalorder %s4571_s16, %s3944_s25  ;;  %s3949_s7 = sshll.u32 %s4136_s12, 4  ;;  %s3950_s7 = int_to_ptr.vmem [resolvable:$false] %s3949_s7 }
  0xea   : > { %s3951_s27 = scalar_lea.vmem %s3950_s7, 2048  ;;  %p3952_p3 = scmp.lt.s32.totalorder %s4571_s16, %s3950_s7 }
  0xeb   : > { %p3947_p5 = pnand %p3945_p13, %p5328_p1  ;;  %p3953_p10 = scmp.lt.s32.totalorder %s3951_s27, %s3944_s25 }
  0xed   : > { %p3948_p6 = pneg %p3947_p5  ;;  %p3954_p2 = por %p3953_p10, %p3952_p3 }
  0xef   : > { %p3955_p9 = pnand %p3954_p2, %p3948_p6 }
  0xf1   : > { %3958 = shalt.err (!%p3955_p9)
}
  0xf2   : > { %p5329_p12 = scmp.ne.s32.totalorder %s5303_s21, 0  ;;  %s5330_s20 = smov 4  }
  0xf3   : > { %s5331_s18 = smov 64   ;;  %s3959_s17 = scalar_lea.hbm %s4430_s6, 2048 }
  0xf4   : > { %3468 = dma.hbm_to_vmem [thread:$0]  (!%p5329_p12), %s4567_s24, 1024, %s4571_s16, %s4386_s11, %s5331_s18, %s5331_s18, %s5330_s20  }
  0xf5   : > { %p3960_p11 = scmp.ne.s32.totalorder %s4430_s6, %s3959_s17  ;;  %s5332_s15 = sld [smem:[#allocation48_spill]] }
  0xf6   : > { %p3968_p6 = scmp.lt.u32.totalorder %s3959_s17, %s4430_s6 }
  0xf7   : > { %p3962_p4 = pnand %p3960_p11, %p5328_p1 }
  0xf9   : > { %p3963_p0 = pneg %p3962_p4 }
  0xfb   : > { %s3964_s14 = scalar_lea.hbm %s5332_s15, 4096  ;;  %p3965_p8 = scmp.lt.u32.totalorder %s4430_s6, %s5332_s15 }
  0xfc   : > { %p3966_p13 = scmp.lt.u32.totalorder %s3964_s14, %s3959_s17 }
  0xfe   : > { %p3967_p5 = por %p3966_p13, %p3965_p8 }
 0x100   : > { %p3969_p3 = por %p3968_p6, %p3967_p5 }
 0x102   : > { %p3970_p10 = pnand %p3969_p3, %p3963_p0 }
 0x104   : > { %3973 = shalt.err (!%p3970_p10)
}
 0x105   : > { %s3974_s11 = scalar_lea.vmem %s4463_s13, 2048  ;;  %s4137_s24 = smov [#allocation13]  }
 0x106   : > { %p3975_p2 = scmp.ne.s32.totalorder %s4463_s13, %s3974_s11  ;;  %s3979_s16 = sshll.u32 %s4137_s24, 4  ;;  %s3980_s16 = int_to_ptr.vmem [resolvable:$false] %s3979_s16 }
 0x107   : > { %s3981_s10 = scalar_lea.vmem %s3980_s16, 4096  ;;  %p3982_p4 = scmp.lt.s32.totalorder %s4463_s13, %s3980_s16 }
 0x108   : > { %p3977_p9 = pnand %p3975_p2, %p5328_p1  ;;  %p3983_p7 = scmp.lt.s32.totalorder %s3981_s10, %s3974_s11 }
 0x10a   : > { %p3978_p11 = pneg %p3977_p9  ;;  %p3984_p8 = por %p3983_p7, %p3982_p4 }
 0x10c   : > { %p3985_p13 = pnand %p3984_p8, %p3978_p11 }
 0x10e   : > { %3988 = shalt.err (!%p3985_p13)
}
 0x10f   : > { %3474 = dma.hbm_to_vmem [thread:$0]  (!%p5329_p12), %s4430_s6, 2048, %s4463_s13, %s4434_s1, %s5331_s18, %s5331_s18, %s5330_s20  }
 0x110   : > { %s5333_s4 = sld [smem:[#allocation33_spill]] }
 0x116   : > { %p5334_p1 = scmp.ne.s32.totalorder %s5333_s4, 0 }
 0x117   : > { %s5335_s25 = sld [smem:[#allocation30_spill]] (!%p5334_p1)  ;;  %s4626_s12 = sand.u32 (!%p5334_p1), 1, %s4099_s22  }
 0x118   : > { %658 = sbr.rel (%p5334_p1) target bundleno = 2748 (0xabc), region = 80  ;;  %s5255_s7 = sshll.u32 (!%p5334_p1), %s4626_s12, 5 }
 0x119   : > { %s661_s27 = scalar_lea.sflag (!%p5334_p1), [#allocation3], %s4626_s12  ;;  %s4632_s21 = scalar_lea.vmem (!%p5334_p1), [#allocation2], %s5255_s7 }
 0x11d   : > { %p5336_p7 = scmp.ne.s32.totalorder (!%p5334_p1), %s5335_s25, 0 }
 0x11f   : > { %4062 = dma.done.wait (%p5336_p7), %s661_s27, 512  }
 0x120   : > { %4064 = vsyncadd (%p5336_p7), %s661_s27, 4294966784  ;;  %p5337_p12 = scmp.eq.s32.totalorder %s4281_s29, 0 }
 0x122   : > { %4066 = dma.done.wait (%p5337_p12), [#allocation6], 384   ;;  %p5338_p0 = pmov %p5337_p12 }
 0x123   : > { %s5339_s6 = sld [smem:[#allocation20_spill]]  ;;  %s5340_s1 = sld [smem:[#allocation31_spill]] }
 0x124   : > { %4068 = vsyncadd (%p5338_p0), [#allocation6], 4294966912  ;;  %s677_s13 = sand.u32 1, %s4281_s29  }
 0x125   : > { %s678_s17 = scalar_lea.sflag [#allocation9], %s677_s13 }
 0x129   : > { %s679_s20 = sand.u32 1, %s5339_s6   ;;  %p5341_p5 = scmp.ne.s32.totalorder %s5340_s1, 0 }
 0x12a   : > { %s3430_s18 = smul.u32 192, %s679_s20 }
 0x12c   : > { %s4644_s2 = scalar_lea.vmem [#allocation8], %s3430_s18 }
 0x12d   : > { %4070 = dma.done.wait (%p5341_p5), %s678_s17, 4096  }
 0x12e   : > { %4072 = vsyncadd (%p5341_p5), %s678_s17, 4294963200  ;;  %s3103_s19 = sshll.u32 %s679_s20, 6  ;;  %s3104_s15 = sshll.u32 %s679_s20, 7 }
 0x12f   : > { %s4650_s14 = scalar_lea.vmem [#allocation10], %s3103_s19  ;;  %s696_s9 = scalar_lea.sflag [#allocation12], %s677_s13 }
 0x130   : > { %s4652_s3 = scalar_lea.vmem [#allocation11], %s3104_s15 }
 0x131   : > { %4074 = dma.done.wait (%p5341_p5), %s696_s9, 4096  }
 0x132   : > { %4076 = vsyncadd (%p5341_p5), %s696_s9, 4294963200  ;;  %s5342_s29 = sld [smem:[#allocation25_spill]]  ;;  %s5345_s19 = sld [smem:[#allocation43_spill]] }
 0x133   : > { %s5346_s5 = sld [smem:[#allocation47_spill]]  ;;  %s5347_s22 = sld [smem:[#allocation50_spill]] }
 0x134   : > { %s5348_s25 = sld [smem:[#allocation51_spill]]  ;;  %s5349_s13 = sld [smem:[#allocation52_spill]] }
 0x135   : > { %s5350_s17 = sld [smem:[#allocation53_spill]]  ;;  %s4698_s30 = scalar_lea.vmem [#allocation13], %s3104_s15 }
 0x136   : > { %s5351_s0 = sshll.u32 %s4626_s12, 5 }
 0x138   : > { %p802_p6 = scmp.lt.s32.totalorder %s5342_s29, 1  ;;  %p3108_p3 = scmp.ne.s32.totalorder %s5342_s29, 0 }
 0x139   : > { %v834_v0 = vld [vmem:[%s4632_s21] sm:$0xff] (!%p3108_p3)  ;;  %v835_v2 = vld [vmem:[%s4632_s21 + $0x8] sm:$0xff] (!%p3108_p3)  ;;  %v836_v6 = vld [vmem:[%s4632_s21 + $0x10] sm:$0xff] (!%p3108_p3) }
 0x13a   : > { %s4660_s11 = scalar_select %p802_p6, %s5342_s29, 1 }
 0x13b   : > { %833 = sbr.rel (%p3108_p3) target bundleno = 323 (0x143), region = 112  ;;  %v842_v1 = vld [vmem:[#allocation5] sm:$0xff] (!%p3108_p3)  ;;  %v838_v3 = vmul.f32 (!%p3108_p3), 11.313708, %v834_v0  ;;  %v839_v4 = vmul.f32 (!%p3108_p3), 11.313708, %v835_v2 }
 0x13c   : > { %s3431_s24 = smul.u32 3, %s4660_s11  ;;  %s3107_s27 = sshll.u32 %s4660_s11, 1  ;;  %v843_v5 = vld [vmem:[#allocation5 + $0x8] sm:$0xff] (!%p3108_p3)  ;;  %v840_v7 = vmul.f32 (!%p3108_p3), 11.313708, %v836_v6  ;;  %v837_v8 = vld [vmem:[%s4632_s21 + $0x18] sm:$0xff] (!%p3108_p3) }
 0x13d   : > { %s4680_s26 = scalar_lea.vmem %s5346_s5, %s3107_s27  ;;  %s818_s16 = scalar_lea.vmem %s5347_s22, %s4660_s11  ;;  %v844_v9 = vadd.f32 (!%p3108_p3), %v842_v1, %v838_v3  ;;  %v845_v10 = vadd.f32 (!%p3108_p3), %v843_v5, %v839_v4  ;;  %v841_v11 = vmul.f32 (!%p3108_p3), 11.313708, %v837_v8 }
 0x13e   : > { %s4675_s9 = scalar_lea.vmem %s5345_s19, %s3431_s24  ;;  %s821_s28 = scalar_lea.vmem %s5348_s25, %s4660_s11  ;;  %v846_v12 = vadd.f32 (!%p3108_p3), %v842_v1, %v840_v7 }
 0x13f   : > { %s824_s20 = scalar_lea.vmem %s5349_s13, %s4660_s11  ;;  %s827_s19 = scalar_lea.vmem %s5350_s17, %s4660_s11  ;;  %v847_v13 = vadd.f32 (!%p3108_p3), %v843_v5, %v841_v11 }
 0x140   : > { %s4702_s5 = scalar_lea.vmem [#allocation14], %s5351_s0 }
 0x141   : > { %848 = vst [vmem:[%s4702_s5] sm:$0xff] (!%p3108_p3), %v844_v9  ;;  %849 = vst [vmem:[%s4702_s5 + $0x8] sm:$0xff] (!%p3108_p3), %v845_v10 }
 0x142   : > { %850 = vst [vmem:[%s4702_s5 + $0x10] sm:$0xff] %v846_v12  ;;  %851 = vst [vmem:[%s4702_s5 + $0x18] sm:$0xff] %v847_v13 }
 0x143 PF: > { %v3619_v14 = vld [vmem:[%s4644_s2 + $0x4] ss:$12 sps:$4 sm:$0xff]   ;;  %v3621_v15 = vld [vmem:[%s4644_s2] ss:$12 sps:$4 sm:$0xff]   ;;  %v4138_v16 = vmov 0   ;;  %v4139_v45 = vmov 0.0   ;;  %v892_v46 = vlaneseq }
 0x144   : > { %1067 = vmatprep.mubr.bf16.mxu0 %v4138_v16  ;;  %1035 = vmatprep.subr.bf16.mxu0 %v3619_v14  ;;  %v3622_v17 = vld [vmem:[%s4644_s2 + $0x1c] ss:$12 sps:$4 sm:$0xff]   ;;  %v3624_v18 = vld [vmem:[%s4644_s2 + $0x18] ss:$12 sps:$4 sm:$0xff]   ;;  %v3625_v19 = vld [vmem:[%s4644_s2 + $0x34] ss:$12 sps:$4 sm:$0xff]  }
 0x145   : > { %1036 = vmatpush1.bf16.msra.mxu0 %v3621_v15  ;;  %v3627_v20 = vld [vmem:[%s4644_s2 + $0x30] ss:$12 sps:$4 sm:$0xff]   ;;  %v3628_v21 = vld [vmem:[%s4644_s2 + $0x4c] ss:$12 sps:$4 sm:$0xff]   ;;  %v3630_v23 = vld [vmem:[%s4644_s2 + $0x48] ss:$12 sps:$4 sm:$0xff]  }
 0x146   : > { %1037 = vmatprep.subr.bf16.mxu0 %v3622_v17  ;;  %v3631_v24 = vld [vmem:[%s4644_s2 + $0x64] ss:$12 sps:$4 sm:$0xff]   ;;  %v3643_v27 = vld [vmem:[%s4644_s2 + $0x8] ss:$12 sps:$4 sm:$0xff]   ;;  %v3644_v28 = vld [vmem:[%s4644_s2 + $0x20] ss:$12 sps:$4 sm:$0xff]  }
 0x147   : > { %v3633_v29 = vld [vmem:[%s4644_s2 + $0x60] ss:$12 sps:$4 sm:$0xff]   ;;  %3292 = vmatprep.subr.bf16.mxu1 %v3643_v27  ;;  %v3634_v30 = vld [vmem:[%s4644_s2 + $0x7c] ss:$12 sps:$4 sm:$0xff]   ;;  %v3645_v31 = vld [vmem:[%s4644_s2 + $0x38] ss:$12 sps:$4 sm:$0xff]  }
 0x148   : > { %3293 = vmatpush3.bf16.msra.mxu1 %v3643_v27  ;;  %v3636_v32 = vld [vmem:[%s4644_s2 + $0x78] ss:$12 sps:$4 sm:$0xff]   ;;  %v3637_v33 = vld [vmem:[%s4644_s2 + $0x94] ss:$12 sps:$4 sm:$0xff]   ;;  %v3646_v34 = vld [vmem:[%s4644_s2 + $0x50] ss:$12 sps:$4 sm:$0xff]  }
 0x149   : > { %1038 = vmatpush1.bf16.msra.mxu0 %v3624_v18  ;;  %v852_v22 = vld [vmem:[%s4702_s5] sm:$0xff]  ;;  %v853_v25 = vld [vmem:[%s4702_s5 + $0x8] sm:$0xff]  ;;  %3294 = vmatprep.subr.bf16.mxu1 %v3644_v28  ;;  %v3639_v35 = vld [vmem:[%s4644_s2 + $0x90] ss:$12 sps:$4 sm:$0xff]   ;;  %vm4140_vm0 = vmmov 0   ;;  %v4749_v47 = vshrl.u32 %v892_v46, 7 }
 0x14a   : > { %1039 = vmatprep.subr.bf16.mxu0 %v3625_v19  ;;  %v856_v26 = vpack.c.bf16 %v853_v25, %v852_v22  ;;  %v3640_v36 = vld [vmem:[%s4644_s2 + $0xac] ss:$12 sps:$4 sm:$0xff]   ;;  %v3647_v37 = vld [vmem:[%s4644_s2 + $0x68] ss:$12 sps:$4 sm:$0xff]   ;;  %v3650_v43 = vld [vmem:[%s4644_s2 + $0xb0] ss:$12 sps:$4 sm:$0xff]  }
 0x14b   : > { %v3642_v38 = vld [vmem:[%s4644_s2 + $0xa8] ss:$12 sps:$4 sm:$0xff]   ;;  %v3648_v39 = vld [vmem:[%s4644_s2 + $0x80] ss:$12 sps:$4 sm:$0xff]   ;;  %v3649_v40 = vld [vmem:[%s4644_s2 + $0x98] ss:$12 sps:$4 sm:$0xff]  }
 0x14c   : > { %3308 = vmatprep.mubr.bf16.mxu1 %v856_v26  ;;  %3295 = vmatpush3.bf16.msra.mxu1 %v3644_v28  ;;  %v854_v41 = vld [vmem:[%s4702_s5 + $0x10] sm:$0xff]  ;;  %v855_v42 = vld [vmem:[%s4702_s5 + $0x18] sm:$0xff]  ;;  %v894_v48 = vsub.s32 0, %v4749_v47  ;;  %v890_v49 = vld [vmem:[%s4675_s9] sm:$0x7]  ;;  %v898_v50 = vsub.s32 1, %v4749_v47 }
 0x14d   : > { %1040 = vmatpush1.bf16.msra.mxu0 %v3627_v20  ;;  %3296 = vmatprep.subr.bf16.mxu1 %v3645_v31  ;;  %v857_v44 = vpack.c.bf16 %v855_v42, %v854_v41  ;;  %vm1195_vm1 = vcmask 261120   ;;  %s4141_s22 = smov 96   ;;  %s4142_s23 = smov 32   ;;  %v902_v10 = vsub.s32 2, %v4749_v47  ;;  %v3209_v42 = vld [vmem:[#allocation7] sm:$0xff]   ;;  %vm1572_vm2 = vcmask 130048  }
 0x14e   : > { %1041 = vmatprep.subr.bf16.mxu0 %v3628_v21  ;;  %v895_v51 = vrot.slane %v890_v49, %v894_v48  ;;  %v899_v53 = vrot.slane %v890_v49, %v898_v50  ;;  %s4143_s8 = smov 64   ;;  %vm2161_vm3 = vcmask 523264   ;;  %vm2166_vm4 = vcmask 785408   ;;  %s5352_s2 = sld [smem:[#allocation45_spill]] }
 0x14f   : > { %v903_v13 = vrot.slane %v890_v49, %v902_v10  ;;  %s5359_s1 = sld [smem:[#allocation26_spill]]  ;;  %s2812_s0 = sshll.u32 %s4702_s5, 4  ;;  %s5135_s0 = int_to_ptr.vmem [resolvable:$true] %s2812_s0 }
 0x150   : > { %3297 = vmatpush3.bf16.msra.mxu1 %v3645_v31  ;;  %s2798_s7 = scalar_lea.sflag [#allocation4], %s4626_s12  ;;  %s3989_s21 = scalar_lea.vmem %s5135_s0, 512 }
 0x151   : > { %1042 = vmatpush1.bf16.msra.mxu0 %v3630_v23  ;;  %3298 = vmatprep.subr.bf16.mxu1 %v3646_v34  ;;  %p3990_p10 = scmp.ne.s32.totalorder %s5135_s0, %s3989_s21 }
 0x152   : > { %1043 = vmatprep.subr.bf16.mxu0 %v3631_v24 }
 0x154   : > { %3299 = vmatpush3.bf16.msra.mxu1 %v3646_v34  ;;  %s5353_s15 = scalar_lea.vmem %s5352_s2, %s4660_s11  ;;  %s4144_s2 = smov [#allocation14]  }
 0x155   : > { %1044 = vmatpush1.bf16.msra.mxu0 %v3633_v29  ;;  %3300 = vmatprep.subr.bf16.mxu1 %v3647_v37  ;;  %s3207_s17 = sshll.u32 %s5359_s1, 9 }
 0x156   : > { %1045 = vmatprep.subr.bf16.mxu0 %v3634_v30 }
 0x158   : > { %3301 = vmatpush3.bf16.msra.mxu1 %v3647_v37 }
 0x159   : > { %1046 = vmatpush1.bf16.msra.mxu0 %v3636_v32  ;;  %3302 = vmatprep.subr.bf16.mxu1 %v3648_v39 }
 0x15a   : > { %1047 = vmatprep.subr.bf16.mxu0 %v3637_v33 }
 0x15c   : > { %3303 = vmatpush3.bf16.msra.mxu1 %v3648_v39 }
 0x15d   : > { %1048 = vmatpush1.bf16.msra.mxu0 %v3639_v35  ;;  %3304 = vmatprep.subr.bf16.mxu1 %v3649_v40 }
 0x15e   : > { %1049 = vmatprep.subr.bf16.mxu0 %v3640_v36 }
 0x160   : > { %3305 = vmatpush3.bf16.msra.mxu1 %v3649_v40 }
 0x161   : > { %1050 = vmatpush1.bf16.msra.mxu0 %v3642_v38  ;;  %3306 = vmatprep.subr.bf16.mxu1 %v3650_v43 }
 0x162   : > { %3312 = vmatprep.subr.bf16.mxu0 %v4139_v45 }
 0x164   : > { %1068 = vmatmul.mubr.bf16.vlgmr.msra.gmra.mrb[0].mxu0 %v856_v26  ;;  %3307 = vmatpush3.bf16.msra.mxu1 %v3650_v43  ;;  %v4819_v43 = vunpack.c.l.bf16 %v3209_v42 }
 0x165   : > { %1077 = vmatprep.mubr.bf16.mxu0 %v4138_v16  ;;  %3324 = vmatprep.subr.bf16.mxu1 %v4139_v45 }
 0x167   : > { %3309 = vmatmul.mubr.bf16.vlgmr.msra.gmra.mrb[0].mxu1 %v857_v44 }
 0x168   : > { %3326 = vmatprep.mubr.msk.bf16.mxu1 %vm4140_vm0, %v4139_v45 }
 0x16c   : > { %1078 = vmatmul.mubr.bf16.gmra.mrb[4].mxu0 %v857_v44  ;;  %v4821_v44 = vunpack.c.h.bf16 %v3209_v42 }
 0x16d   : > { %3314 = vmatprep.mubr.msk.bf16.mxu0 %vm4140_vm0, %v4139_v45 }
 0x237   : > { %v1069_v52 = vpop.f32.mrb[0].mxu0 }
 0x238   : > { %v1071_v54 = vpop.f32.mrb[1].mxu0  ;;  %v1070_v56 = vadd.f32 %v1069_v52, %v895_v51 }
 0x239   : > { %v1073_v55 = vpop.f32.mrb[2].mxu0  ;;  %v1072_v59 = vadd.f32 %v1071_v54, %v899_v53 }
 0x23a   : > { %v1074_v57 = vadd.f32 %v1073_v55, %v895_v51  ;;  %v1075_v58 = vpop.f32.mrb[3].mxu0  ;;  %v3310_v11 = vpop.f32.mrb[0].mxu1 }
 0x23b   : > { %v1076_v60 = vadd.f32 %v1075_v58, %v899_v53  ;;  %v1122_v12 = vpop.f32.mrb[1].mxu1  ;;  %v1131_v17 = vadd.f32 %v3310_v11, %v903_v13 }
 0x23c   : > { %v1137_v61 = vpack.c.bf16 %v1074_v57, %v1070_v56  ;;  %v3311_v14 = vpop.f32.mrb[2].mxu1  ;;  %v1123_v18 = vadd.f32 %v1122_v12, %v903_v13 }
 0x23d   : > { %v1138_v62 = vpack.c.bf16 %v1076_v60, %v1072_v59  ;;  %v1125_v15 = vpop.f32.mrb[3].mxu1  ;;  %v1134_v19 = vadd.f32 %v3311_v14, %v903_v13 }
 0x23e   : > { %1145 = vrot.lane.b32.xlu1 %v1137_v61, %s4141_s22  ;;  %v1126_v20 = vadd.f32 %v1125_v15, %v903_v13 }
 0x23f   : > { %1159 = vrot.lane.b32.xlu0 %v1138_v62, %s4141_s22  ;;  %v1200_v63 = vsel %vm1195_vm1, %v1138_v62, 0  ;;  %v1079_v0 = vpop.f32.mrb[4].mxu0  ;;  %v4776_v21 = vpack.c.bf16 %v1134_v19, %v1131_v17 }
 0x240   : > { %3313 = vmatpush3.bf16.xpose.msra.mxu0 %v1200_v63  ;;  %v1080_v1 = vadd.f32 %v1079_v0, %v895_v51  ;;  %v1081_v2 = vpop.f32.mrb[5].mxu0  ;;  %v1139_v22 = vpack.c.bf16 %v1126_v20, %v1123_v18 }
 0x241   : > { %v1082_v3 = vadd.f32 %v1081_v2, %v899_v53  ;;  %v1083_v4 = vpop.f32.mrb[6].mxu0  ;;  %3318 = vmatprep.subr.bf16.mxu0 %v4139_v45 }
 0x242   : > { %1167 = vrot.lane.b32.xlu1 %v1138_v62, %s4142_s23  ;;  %v1084_v5 = vadd.f32 %v1083_v4, %v895_v51  ;;  %v1085_v6 = vpop.f32.mrb[7].mxu0 }
 0x243   : > { %1163 = vrot.lane.b32.xlu0 %v1138_v62, %s4143_s8  ;;  %v1086_v7 = vadd.f32 %v1085_v6, %v899_v53 }
 0x244   : > { %v1140_v8 = vpack.c.bf16 %v1084_v5, %v1080_v1 }
 0x245   : > { %v1141_v9 = vpack.c.bf16 %v1086_v7, %v1082_v3 }
 0x246   : > { %1153 = vrot.lane.b32.xlu1 %v1137_v61, %s4142_s23 }
 0x247   : > { %1149 = vrot.lane.b32.xlu0 %v1137_v61, %s4143_s8  ;;  %3315 = vmatmul.mubr.msk.bf16.vlgmr.msra.gmra.mrb[8].mxu0 %vm1195_vm1, %v1137_v61  ;;  %v1388_v32 = vsel %vm1195_vm1, %v1141_v9, 0 }
 0x248   : > { %3320 = vmatprep.mubr.msk.bf16.mxu0 %vm4140_vm0, %v4139_v45 }
 0x24a   : > { %1165 = vrot.lane.b32.xlu1 %v1141_v9, %s4143_s8 }
 0x24b   : > { %1161 = vrot.lane.b32.xlu0 %v1141_v9, %s4141_s22 }
 0x24e   : > { %1169 = vrot.lane.b32.xlu1 %v1141_v9, %s4142_s23 }
 0x24f   : > { %1147 = vrot.lane.b32.xlu0 %v1140_v8, %s4141_s22 }
 0x252   : > { %1155 = vrot.lane.b32.xlu1 %v1140_v8, %s4142_s23 }
 0x253   : > { %1151 = vrot.lane.b32.xlu0 %v1140_v8, %s4143_s8 }
 0x256   : > { %1173 = vrot.lane.b32.xlu1 %v1139_v22, %s4141_s22 }
 0x257   : > { %1179 = vrot.lane.b32.xlu0 %v1139_v22, %s4143_s8 }
 0x25a   : > { %1185 = vrot.lane.b32.xlu1 %v1139_v22, %s4142_s23 }
 0x25e   : > { %1175 = vrot.lane.b32.xlu1 %v4776_v21, %s4141_s22 }
 0x2b0   : > { %v1146_v23 = vpop.permute.xlu1 %1145 }
 0x2b1   : > { %v1160_v24 = vpop.permute.xlu0 %1159 }
 0x2b2   : > { %v1247_v25 = vsel %vm1195_vm1, %v1160_v24, 0 }
 0x2b3   : > { %3319 = vmatpush3.bf16.xpose.msra.mxu0 %v1247_v25 }
 0x2b4   : > { %3330 = vmatprep.subr.bf16.mxu0 %v4139_v45  ;;  %v1168_v26 = vpop.permute.xlu1 %1167 }
 0x2b5   : > { %v1164_v27 = vpop.permute.xlu0 %1163  ;;  %v1341_v30 = vsel %vm1195_vm1, %v1168_v26, 0 }
 0x2b6   : > { %v1294_v28 = vsel %vm1195_vm1, %v1164_v27, 0 }
 0x2b7   : > { %3325 = vmatpush3.bf16.xpose.msra.mxu1 %v1294_v28 }
 0x2b8   : > { %3336 = vmatprep.subr.bf16.mxu1 %v4139_v45  ;;  %v1154_v31 = vpop.permute.xlu1 %1153 }
 0x2b9   : > { %v1150_v29 = vpop.permute.xlu0 %1149 }
 0x2ba   : > { %3321 = vmatmul.mubr.msk.bf16.vlgmr.msra.gmra.mrb[12].mxu0 %vm1195_vm1, %v1146_v23 }
 0x2bb   : > { %3331 = vmatpush3.bf16.xpose.msra.mxu0 %v1341_v30  ;;  %3332 = vmatprep.mubr.msk.bf16.mxu0 %vm4140_vm0, %v4139_v45 }
 0x2bc   : > { %3342 = vmatprep.subr.bf16.mxu0 %v4139_v45  ;;  %v1166_v35 = vpop.permute.xlu1 %1165 }
 0x2bd   : > { %v1162_v33 = vpop.permute.xlu0 %1161  ;;  %v1482_v36 = vsel %vm1195_vm1, %v1166_v35, 0 }
 0x2be   : > { %3327 = vmatmul.mubr.msk.bf16.vlgmr.msra.gmra.mrb[4].mxu1 %vm1195_vm1, %v1150_v29  ;;  %v1435_v34 = vsel %vm1195_vm1, %v1162_v33, 0 }
 0x2bf   : > { %3337 = vmatpush3.bf16.xpose.msra.mxu1 %v1388_v32  ;;  %3338 = vmatprep.mubr.msk.bf16.mxu1 %vm4140_vm0, %v4139_v45 }
 0x2c0   : > { %3348 = vmatprep.subr.bf16.mxu1 %v4139_v45  ;;  %v1170_v37 = vpop.permute.xlu1 %1169 }
 0x2c1   : > { %v1148_v38 = vpop.permute.xlu0 %1147  ;;  %v1529_v39 = vsel %vm1195_vm1, %v1170_v37, 0 }
 0x2c2   : > { %3333 = vmatmul.mubr.msk.bf16.vlgmr.msra.gmra.mrb[16].mxu0 %vm1195_vm1, %v1154_v31 }
 0x2c3   : > { %3343 = vmatpush3.bf16.xpose.msra.mxu0 %v1435_v34  ;;  %3344 = vmatprep.mubr.msk.bf16.mxu0 %vm4140_vm0, %v4139_v45 }
 0x2c4   : > { %3354 = vmatprep.subr.bf16.mxu0 %v4139_v45  ;;  %v1156_v41 = vpop.permute.xlu1 %1155 }
 0x2c5   : > { %v1152_v40 = vpop.permute.xlu0 %1151 }
 0x2c6   : > { %3339 = vmatmul.mubr.msk.bf16.vlgmr.msra.gmra.mrb[8].mxu1 %vm1195_vm1, %v1140_v8 }
 0x2c7   : > { %3349 = vmatpush3.bf16.xpose.msra.mxu1 %v1482_v36  ;;  %3350 = vmatprep.mubr.msk.bf16.mxu1 %vm4140_vm0, %v4139_v45 }
 0x2c8   : > { %3360 = vmatprep.subr.bf16.mxu1 %v4139_v45  ;;  %v1174_v57 = vpop.permute.xlu1 %1173 }
 0x2ca   : > { %3345 = vmatmul.mubr.msk.bf16.vlgmr.msra.gmra.mrb[20].mxu0 %vm1195_vm1, %v1148_v38 }
 0x2cb   : > { %3355 = vmatpush3.bf16.xpose.msra.mxu0 %v1529_v39  ;;  %3356 = vmatprep.mubr.msk.bf16.mxu0 %vm4140_vm0, %v4139_v45 }
 0x2cc   : > { %3366 = vmatprep.subr.bf16.mxu0 %v4139_v45  ;;  %v4882_v36 = vpop.permute.xlu1 %1185 }
 0x2ce   : > { %3351 = vmatmul.mubr.msk.bf16.vlgmr.msra.gmra.mrb[12].mxu1 %vm1195_vm1, %v1152_v40 }
 0x2cf   : > { %3361 = vmatpush3.bf16.msra.mxu1 %v1139_v22  ;;  %3362 = vmatprep.mubr.msk.bf16.mxu1 %vm4140_vm0, %v4139_v45 }
 0x2d0   : > { %3372 = vmatprep.subr.bf16.mxu1 %v4139_v45 }
 0x2d2   : > { %3357 = vmatmul.mubr.msk.bf16.vlgmr.msra.gmra.mrb[24].mxu0 %vm1195_vm1, %v1156_v41 }
 0x2d3   : > { %3368 = vmatprep.mubr.msk.bf16.mxu0 %vm4140_vm0, %v4139_v45  ;;  %3367 = vmatpush3.bf16.msra.mxu0 %v1174_v57  ;;  %v4897_v57 = vpop.permute.xlu1 %1175 }
 0x2d4   : > { %3378 = vmatprep.subr.bf16.mxu0 %v4139_v45 }
 0x31a   : > { %v1236_v46 = vpop.f32.mrb[8].mxu0 }
 0x31b   : > { %v4824_v49 = vadd.f32 %v4819_v43, %v1236_v46  ;;  %v3316_v51 = vpop.f32.mrb[9].mxu0 }
 0x31c   : > { %v1239_v52 = vpop.f32.mrb[10].mxu0 }
 0x31d   : > { %v4827_v53 = vadd.f32 %v4821_v44, %v1239_v52  ;;  %v3317_v54 = vpop.f32.mrb[11].mxu0  ;;  %v1573_v55 = vsel %vm1572_vm2, %v4824_v49, -inf  ;;  %v1180_v52 = vpop.permute.xlu0 %1179 }
 0x31e   : > { %1574 = vmax.xlane.f32.xlu0 %v1573_v55 }
 0x31f   : > { %v1576_v56 = vsel %vm1572_vm2, %v4827_v53, -inf }
 0x320   : > { %1577 = vmax.xlane.f32.xlu1 %v1576_v56 }
 0x38d   : > { %v1283_v58 = vpop.f32.mrb[12].mxu0 }
 0x38e   : > { %v4835_v59 = vadd.f32 %v4819_v43, %v1283_v58  ;;  %v3322_v60 = vpop.f32.mrb[13].mxu0 }
 0x38f   : > { %v1286_v61 = vpop.f32.mrb[14].mxu0 }
 0x390   : > { %v4838_v62 = vadd.f32 %v4821_v44, %v1286_v61  ;;  %v3323_v63 = vpop.f32.mrb[15].mxu0  ;;  %v1579_v0 = vsel %vm1572_vm2, %v4835_v59, -inf }
 0x391   : > { %v1330_v1 = vpop.f32.mrb[4].mxu1  ;;  %1580 = vmax.xlane.f32.xlu0 %v1579_v0 }
 0x392   : > { %v4843_v2 = vadd.f32 %v4819_v43, %v1330_v1  ;;  %v3328_v3 = vpop.f32.mrb[5].mxu1  ;;  %v1582_v8 = vsel %vm1572_vm2, %v4838_v62, -inf }
 0x393   : > { %v1333_v4 = vpop.f32.mrb[6].mxu1 }
 0x394   : > { %v4846_v5 = vadd.f32 %v4821_v44, %v1333_v4  ;;  %v3329_v6 = vpop.f32.mrb[7].mxu1  ;;  %v1585_v7 = vsel %vm1572_vm2, %v4843_v2, -inf }
 0x395   : > { %1586 = vmax.xlane.f32.xlu1 %v1585_v7  ;;  %1583 = vmax.xlane.f32.xlu0 %v1582_v8  ;;  %v1377_v9 = vpop.f32.mrb[16].mxu0 }
 0x396   : > { %v4853_v10 = vadd.f32 %v4819_v43, %v1377_v9  ;;  %v3334_v11 = vpop.f32.mrb[17].mxu0  ;;  %v1588_v15 = vsel %vm1572_vm2, %v4846_v5, -inf }
 0x397   : > { %v1380_v12 = vpop.f32.mrb[18].mxu0 }
 0x398   : > { %v4856_v13 = vadd.f32 %v4821_v44, %v1380_v12  ;;  %v3335_v14 = vpop.f32.mrb[19].mxu0  ;;  %v1591_v17 = vsel %vm1572_vm2, %v4853_v10, -inf }
 0x399   : > { %v1424_v18 = vpop.f32.mrb[8].mxu1  ;;  %1589 = vmax.xlane.f32.xlu0 %v1588_v15  ;;  %1592 = vmax.xlane.f32.xlu1 %v1591_v17 }
 0x39a   : > { %v4863_v19 = vadd.f32 %v4819_v43, %v1424_v18  ;;  %v3340_v20 = vpop.f32.mrb[9].mxu1  ;;  %v1594_v26 = vsel %vm1572_vm2, %v4856_v13, -inf }
 0x39b   : > { %v1427_v22 = vpop.f32.mrb[10].mxu1 }
 0x39c   : > { %v4866_v23 = vadd.f32 %v4821_v44, %v1427_v22  ;;  %v3341_v24 = vpop.f32.mrb[11].mxu1  ;;  %v1597_v25 = vsel %vm1572_vm2, %v4863_v19, -inf }
 0x39d   : > { %1598 = vmax.xlane.f32.xlu1 %v1597_v25  ;;  %1595 = vmax.xlane.f32.xlu0 %v1594_v26  ;;  %v1471_v27 = vpop.f32.mrb[20].mxu0 }
 0x39e   : > { %v4873_v28 = vadd.f32 %v4819_v43, %v1471_v27  ;;  %v3346_v29 = vpop.f32.mrb[21].mxu0  ;;  %v1600_v33 = vsel %vm1572_vm2, %v4866_v23, -inf }
 0x39f   : > { %v1474_v30 = vpop.f32.mrb[22].mxu0 }
 0x3a0   : > { %v4876_v31 = vadd.f32 %v4821_v44, %v1474_v30  ;;  %v3347_v32 = vpop.f32.mrb[23].mxu0  ;;  %v1603_v34 = vsel %vm1572_vm2, %v4873_v28, -inf }
 0x3a1   : > { %v1518_v35 = vpop.f32.mrb[12].mxu1  ;;  %1601 = vmax.xlane.f32.xlu0 %v1600_v33  ;;  %1604 = vmax.xlane.f32.xlu1 %v1603_v34 }
 0x3a2   : > { %v4885_v37 = vadd.f32 %v4819_v43, %v1518_v35  ;;  %v3352_v38 = vpop.f32.mrb[13].mxu1  ;;  %v1606_v46 = vsel %vm1572_vm2, %v4876_v31, -inf }
 0x3a3   : > { %v1521_v39 = vpop.f32.mrb[14].mxu1 }
 0x3a4   : > { %v4888_v40 = vadd.f32 %v4821_v44, %v1521_v39  ;;  %v3353_v41 = vpop.f32.mrb[15].mxu1  ;;  %v1609_v42 = vsel %vm1572_vm2, %v4885_v37, -inf }
 0x3a5   : > { %1610 = vmax.xlane.f32.xlu1 %v1609_v42  ;;  %1607 = vmax.xlane.f32.xlu0 %v1606_v46  ;;  %v1565_v51 = vpop.f32.mrb[24].mxu0 }
 0x3a6   : > { %v4895_v54 = vadd.f32 %v4819_v43, %v1565_v51  ;;  %v3358_v55 = vpop.f32.mrb[25].mxu0  ;;  %v1612_v61 = vsel %vm1572_vm2, %v4888_v40, -inf }
 0x3a7   : > { %v1568_v56 = vpop.f32.mrb[26].mxu0 }
 0x3a8   : > { %v4900_v58 = vadd.f32 %v4821_v44, %v1568_v56  ;;  %v3359_v60 = vpop.f32.mrb[27].mxu0  ;;  %v1615_v63 = vsel %vm1572_vm2, %v4895_v54, -inf }
 0x3a9   : > { %1613 = vmax.xlane.f32.xlu0 %v1612_v61  ;;  %1616 = vmax.xlane.f32.xlu1 %v1615_v63 }
 0x3aa   : > { %v1618_v1 = vsel %vm1572_vm2, %v4900_v58, -inf }
 0x3ab   : > { %v1575_v0 = vpop.xlane.xlu0 %1574 }
 0x3ac   : > { %v1621_v43 = vsub.f32 %v4824_v49, %v1575_v0 }
 0x3ad   : > { %v1578_v3 = vpop.xlane.xlu1 %1577  ;;  %1619 = vmax.xlane.f32.xlu0 %v1618_v1 }
 0x3ae   : > { %v1637_v4 = vmul.f32 1.442695, %v1621_v43  ;;  %v1622_v44 = vsub.f32 %v4827_v53, %v1578_v3 }
 0x3b0   : > { %v1639_v6 = vmul.f32 1.442695, %v1622_v44  ;;  %3699 = vpow2.f32 %v1637_v4 }
 0x3b2   : > { %3701 = vpow2.f32 %v1639_v6 }
 0x3ba   : > { %1187 = vrot.lane.b32.xlu1 %v4776_v21, %s4142_s23  ;;  %v4912_v7 = vpop.eup %3699 }
 0x3bc   : > { %v4914_v8 = vpop.eup %3701 }
 0x3bd   : > { %v1717_v49 = vpack.c.bf16 %v4914_v8, %v4912_v7 }
 0x3bf   : > { %3363 = vmatmul.mubr.msk.bf16.vlgmr.msra.gmra.mrb[16].mxu1 %vm1572_vm2, %v1717_v49 }
 0x3c0   : > { %3373 = vmatpush3.bf16.msra.mxu1 %v1180_v52  ;;  %3374 = vmatprep.mubr.msk.bf16.mxu1 %vm4140_vm0, %v4139_v45 }
 0x3c1   : > { %3384 = vmatprep.subr.bf16.mxu1 %v4139_v45 }
 0x3c3   : > { %1181 = vrot.lane.b32.xlu0 %v4776_v21, %s4143_s8 }
 0x41e   : > { %v1581_v53 = vpop.xlane.xlu0 %1580 }
 0x41f   : > { %v1623_v9 = vsub.f32 %v4835_v59, %v1581_v53 }
 0x421   : > { %v1641_v11 = vmul.f32 1.442695, %v1623_v9 }
 0x422   : > { %v1587_v12 = vpop.xlane.xlu1 %1586  ;;  %v1584_v14 = vpop.xlane.xlu0 %1583 }
 0x423   : > { %3703 = vpow2.f32 %v1641_v11  ;;  %v1625_v15 = vsub.f32 %v4843_v2, %v1587_v12  ;;  %v1624_v17 = vsub.f32 %v4838_v62, %v1584_v14 }
 0x425   : > { %v1645_v18 = vmul.f32 1.442695, %v1625_v15  ;;  %v1643_v20 = vmul.f32 1.442695, %v1624_v17 }
 0x426   : > { %v1590_v22 = vpop.xlane.xlu0 %1589  ;;  %v1593_v24 = vpop.xlane.xlu1 %1592 }
 0x427   : > { %3705 = vpow2.f32 %v1645_v18  ;;  %v1626_v25 = vsub.f32 %v4846_v5, %v1590_v22  ;;  %v1627_v26 = vsub.f32 %v4853_v10, %v1593_v24 }
 0x428   : > { %3707 = vpow2.f32 %v1643_v20 }
 0x429   : > { %v1647_v27 = vmul.f32 1.442695, %v1626_v25  ;;  %v1649_v59 = vmul.f32 1.442695, %v1627_v26 }
 0x42a   : > { %v1599_v29 = vpop.xlane.xlu1 %1598  ;;  %v1596_v30 = vpop.xlane.xlu0 %1595 }
 0x42b   : > { %3709 = vpow2.f32 %v1647_v27  ;;  %v1629_v32 = vsub.f32 %v4863_v19, %v1599_v29  ;;  %v1628_v2 = vsub.f32 %v4856_v13, %v1596_v30 }
 0x42c   : > { %3711 = vpow2.f32 %v1649_v59 }
 0x42d   : > { %v3704_v62 = vpop.eup %3703  ;;  %v1651_v33 = vmul.f32 1.442695, %v1628_v2  ;;  %v1653_v34 = vmul.f32 1.442695, %v1629_v32 }
 0x42e   : > { %v1602_v35 = vpop.xlane.xlu0 %1601  ;;  %v1605_v38 = vpop.xlane.xlu1 %1604  ;;  %v1675_v5 = vsel %vm1572_vm2, %v3704_v62, 0.0 }
 0x42f   : > { %v1630_v10 = vsub.f32 %v4866_v23, %v1602_v35  ;;  %v1631_v39 = vsub.f32 %v4873_v28, %v1605_v38  ;;  %1676 = vadd.xlane.f32.xlu0 %v1675_v5  ;;  %3713 = vpow2.f32 %v1651_v33  ;;  %v1669_v33 = vsel %vm1572_vm2, %v4912_v7, 0.0 }
 0x430   : > { %3715 = vpow2.f32 %v1653_v34 }
 0x431   : > { %v3706_v41 = vpop.eup %3705  ;;  %v1655_v42 = vmul.f32 1.442695, %v1630_v10  ;;  %v1657_v46 = vmul.f32 1.442695, %v1631_v39  ;;  %v3651_v39 = vld [vmem:[%s4650_s14] sm:$0xff]  }
 0x432   : > { %v3708_v19 = vpop.eup %3707  ;;  %v1611_v13 = vpop.xlane.xlu1 %1610  ;;  %v1681_v52 = vsel %vm1572_vm2, %v3706_v41, 0.0 }
 0x433   : > { %v1608_v51 = vpop.xlane.xlu0 %1607  ;;  %3717 = vpow2.f32 %v1655_v42  ;;  %v1633_v55 = vsub.f32 %v4885_v37, %v1611_v13  ;;  %v1678_v23 = vsel %vm1572_vm2, %v3708_v19, 0.0  ;;  %1682 = vadd.xlane.f32.xlu0 %v1681_v52  ;;  %v1718_v28 = vpack.c.bf16 %v3708_v19, %v3704_v62  ;;  %v3652_v19 = vld [vmem:[%s4650_s14 + $0x8] sm:$0xff]   ;;  %v3653_v52 = vld [vmem:[%s4650_s14 + $0x10] sm:$0xff]  }
 0x434   : > { %v1632_v56 = vsub.f32 %v4876_v31, %v1608_v51  ;;  %3719 = vpow2.f32 %v1657_v46  ;;  %1679 = vadd.xlane.f32.xlu1 %v1678_v23  ;;  %v3654_v23 = vld [vmem:[%s4650_s14 + $0x18] sm:$0xff]  }
 0x435   : > { %v3710_v60 = vpop.eup %3709  ;;  %v1661_v61 = vmul.f32 1.442695, %v1633_v55  ;;  %3369 = vmatmul.mubr.msk.bf16.vlgmr.msra.gmra.mrb[28].mxu0 %vm1572_vm2, %v1718_v28 }
 0x436   : > { %v1659_v63 = vmul.f32 1.442695, %v1632_v56  ;;  %v3712_v0 = vpop.eup %3711  ;;  %v1617_v1 = vpop.xlane.xlu1 %1616  ;;  %v1684_v3 = vsel %vm1572_vm2, %v3710_v60, 0.0  ;;  %v1719_v4 = vpack.c.bf16 %v3710_v60, %v3706_v41  ;;  %3379 = vmatpush3.bf16.msra.mxu0 %v4882_v36  ;;  %3380 = vmatprep.mubr.msk.bf16.mxu0 %vm4140_vm0, %v4139_v45 }
 0x437   : > { %v1614_v43 = vpop.xlane.xlu0 %1613  ;;  %3721 = vpow2.f32 %v1661_v61  ;;  %v1635_v37 = vsub.f32 %v4895_v54, %v1617_v1  ;;  %v1687_v44 = vsel %vm1572_vm2, %v3712_v0, 0.0  ;;  %1685 = vadd.xlane.f32.xlu0 %v1684_v3  ;;  %3390 = vmatprep.subr.bf16.mxu0 %v4139_v45  ;;  %v3655_v1 = vld [vmem:[%s4650_s14 + $0x20] sm:$0xff]  }
 0x438   : > { %v1634_v31 = vsub.f32 %v4888_v40, %v1614_v43  ;;  %3723 = vpow2.f32 %v1659_v63  ;;  %1688 = vadd.xlane.f32.xlu1 %v1687_v44  ;;  %3375 = vmatmul.mubr.msk.bf16.vlgmr.msra.gmra.mrb[20].mxu1 %vm1572_vm2, %v1719_v4 }
 0x439   : > { %v1665_v49 = vmul.f32 1.442695, %v1635_v37  ;;  %3385 = vmatpush3.bf16.msra.mxu1 %v4776_v21  ;;  %v3714_v53 = vpop.eup %3713  ;;  %3386 = vmatprep.mubr.msk.bf16.mxu1 %vm4140_vm0, %v4139_v45 }
 0x43a   : > { %v1663_v6 = vmul.f32 1.442695, %v1634_v31  ;;  %v1690_v54 = vsel %vm1572_vm2, %v3714_v53, 0.0  ;;  %v1720_v9 = vpack.c.bf16 %v3714_v53, %v3712_v0  ;;  %3396 = vmatprep.subr.bf16.mxu1 %v4139_v45  ;;  %v3716_v11 = vpop.eup %3715  ;;  %v1188_v27 = vpop.permute.xlu1 %1187 }
 0x43b   : > { %v1620_v36 = vpop.xlane.xlu0 %1619  ;;  %1691 = vadd.xlane.f32.xlu0 %v1690_v54  ;;  %v1693_v34 = vsel %vm1572_vm2, %v3716_v11, 0.0 }
 0x43c   : > { %3725 = vpow2.f32 %v1663_v6  ;;  %v1636_v40 = vsub.f32 %v4900_v58, %v1620_v36 }
 0x43d   : > { %3727 = vpow2.f32 %v1665_v49  ;;  %v3718_v21 = vpop.eup %3717  ;;  %3381 = vmatmul.mubr.msk.bf16.vlgmr.msra.gmra.mrb[32].mxu0 %vm1572_vm2, %v1720_v9 }
 0x43e   : > { %v1667_v12 = vmul.f32 1.442695, %v1636_v40  ;;  %v3720_v14 = vpop.eup %3719  ;;  %v1721_v17 = vpack.c.bf16 %v3718_v21, %v3716_v11  ;;  %3391 = vmatpush3.bf16.msra.mxu0 %v4897_v57  ;;  %3392 = vmatprep.mubr.msk.bf16.mxu0 %vm4140_vm0, %v4139_v45  ;;  %v1696_v35 = vsel %vm1572_vm2, %v3718_v21, 0.0 }
 0x43f   : > { %v1182_v15 = vpop.permute.xlu0 %1181  ;;  %v1699_v58 = vsel %vm1572_vm2, %v3720_v14, 0.0  ;;  %3402 = vmatprep.subr.bf16.mxu0 %v4139_v45 }
 0x440   : > { %3729 = vpow2.f32 %v1667_v12  ;;  %1700 = vadd.xlane.f32.xlu1 %v1699_v58  ;;  %3387 = vmatmul.mubr.msk.bf16.vlgmr.msra.gmra.mrb[24].mxu1 %vm1572_vm2, %v1721_v17 }
 0x441   : > { %v3722_v18 = vpop.eup %3721  ;;  %3397 = vmatpush3.bf16.msra.mxu1 %v1182_v15  ;;  %3398 = vmatprep.mubr.msk.bf16.mxu1 %vm4140_vm0, %v4139_v45 }
 0x442   : > { %v3724_v20 = vpop.eup %3723  ;;  %v1705_v22 = vsel %vm1572_vm2, %v3722_v18, 0.0  ;;  %3408 = vmatprep.subr.bf16.mxu1 %v3651_v39 }
 0x443   : > { %v1702_v57 = vsel %vm1572_vm2, %v3724_v20, 0.0  ;;  %v1722_v24 = vpack.c.bf16 %v3724_v20, %v3720_v14  ;;  %v3656_v20 = vld [vmem:[%s4650_s14 + $0x28] sm:$0xff]  }
 0x444   : > { %1706 = vadd.xlane.f32.xlu1 %v1705_v22  ;;  %1703 = vadd.xlane.f32.xlu0 %v1702_v57 }
 0x445   : > { %3393 = vmatmul.mubr.msk.bf16.vlgmr.msra.gmra.mrb[36].mxu0 %vm1572_vm2, %v1722_v24 }
 0x446   : > { %v3726_v25 = vpop.eup %3725  ;;  %3403 = vmatpush3.bf16.msra.mxu0 %v1188_v27  ;;  %3404 = vmatprep.mubr.msk.bf16.mxu0 %vm4140_vm0, %v4139_v45  ;;  %v1672_v45 = vsel %vm1572_vm2, %v4914_v8, 0.0 }
 0x447   : > { %v3728_v26 = vpop.eup %3727  ;;  %v1708_v59 = vsel %vm1572_vm2, %v3726_v25, 0.0  ;;  %v1723_v29 = vpack.c.bf16 %v3726_v25, %v3722_v18 }
 0x448   : > { %v1711_v30 = vsel %vm1572_vm2, %v3728_v26, 0.0  ;;  %1709 = vadd.xlane.f32.xlu0 %v1708_v59 }
 0x449   : > { %1712 = vadd.xlane.f32.xlu1 %v1711_v30  ;;  %3399 = vmatmul.mubr.msk.bf16.vlgmr.msra.gmra.mrb[28].mxu1 %vm1572_vm2, %v1723_v29 }
 0x44a   : > { %v3730_v32 = vpop.eup %3729  ;;  %3409 = vmatpush3.bf16.msra.mxu1 %v3651_v39 }
 0x44b   : > { %v1714_v2 = vsel %vm1572_vm2, %v3730_v32, 0.0  ;;  %v1724_v62 = vpack.c.bf16 %v3730_v32, %v3728_v26  ;;  %3410 = vmatprep.subr.bf16.mxu1 %v3652_v19  ;;  %v3657_v32 = vld [vmem:[%s4650_s14 + $0x30] sm:$0xff]  }
 0x44c   : > { %1715 = vadd.xlane.f32.xlu0 %v1714_v2 }
 0x44d   : > { %1670 = vadd.xlane.f32.xlu1 %v1669_v33  ;;  %3405 = vmatmul.mubr.msk.bf16.vlgmr.msra.gmra.mrb[40].mxu0 %vm1572_vm2, %v1724_v62 }
 0x44e   : > { %2506 = vmatprep.mubr.bf16.mxu0 %v4138_v16  ;;  %3411 = vmatpush3.bf16.msra.mxu1 %v3652_v19 }
 0x44f   : > { %3412 = vmatprep.subr.bf16.mxu1 %v3653_v52 }
 0x450   : > { %1673 = vadd.xlane.f32.xlu0 %v1672_v45 }
 0x451   : > { %1694 = vadd.xlane.f32.xlu1 %v1693_v34 }
 0x452   : > { %3413 = vmatpush3.bf16.msra.mxu1 %v3653_v52 }
 0x453   : > { %3414 = vmatprep.subr.bf16.mxu1 %v3654_v23 }
 0x454   : > { %1697 = vadd.xlane.f32.xlu0 %v1696_v35  ;;  %v3658_v35 = vld [vmem:[%s4650_s14 + $0x38] sm:$0xff]  }
 0x456   : > { %3415 = vmatpush3.bf16.msra.mxu1 %v3654_v23 }
 0x457   : > { %3416 = vmatprep.subr.bf16.mxu1 %v3655_v1 }
 0x45a   : > { %3417 = vmatpush3.bf16.msra.mxu1 %v3655_v1 }
 0x45b   : > { %3418 = vmatprep.subr.bf16.mxu1 %v3656_v20 }
 0x45e   : > { %3419 = vmatpush3.bf16.msra.mxu1 %v3656_v20 }
 0x45f   : > { %3420 = vmatprep.subr.bf16.mxu1 %v3657_v32 }
 0x462   : > { %3421 = vmatpush3.bf16.msra.mxu1 %v3657_v32 }
 0x463   : > { %3422 = vmatprep.subr.bf16.mxu1 %v3658_v35 }
 0x466   : > { %3423 = vmatpush3.bf16.msra.mxu1 %v3658_v35 }
 0x492   : > { %v4980_v38 = vpop.f32.mrb[16].mxu1 }
 0x493   : > { %v3364_v7 = vpop.f32.mrb[17].mxu1 }
 0x494   : > { %v4982_v5 = vpop.f32.mrb[18].mxu1 }
 0x495   : > { %v3365_v10 = vpop.f32.mrb[19].mxu1 }
 0x4bc   : > { %v1677_v41 = vpop.xlane.xlu0 %1676 }
 0x4bd   : > { %3731 = vrcp.f32 %v1677_v41 }
 0x4c0   : > { %v1683_v8 = vpop.xlane.xlu0 %1682 }
 0x4c1   : > { %v1680_v42 = vpop.xlane.xlu1 %1679 }
 0x4c2   : > { %3733 = vrcp.f32 %v1680_v42 }
 0x4c3   : > { %3735 = vrcp.f32 %v1683_v8 }
 0x4c4   : > { %v1686_v46 = vpop.xlane.xlu0 %1685 }
 0x4c5   : > { %3737 = vrcp.f32 %v1686_v46  ;;  %v1689_v13 = vpop.xlane.xlu1 %1688 }
 0x4c6   : > { %3739 = vrcp.f32 %v1689_v13 }
 0x4c7   : > { %v3732_v28 = vpop.eup %3731 }
 0x4c8   : > { %v1692_v51 = vpop.xlane.xlu0 %1691 }
 0x4c9   : > { %3741 = vrcp.f32 %v1692_v51 }
 0x4cc   : > { %v3734_v63 = vpop.eup %3733 }
 0x4cd   : > { %v1701_v55 = vpop.xlane.xlu1 %1700  ;;  %v3736_v3 = vpop.eup %3735 }
 0x4ce   : > { %3743 = vrcp.f32 %v1701_v55 }
 0x4cf   : > { %v3738_v6 = vpop.eup %3737 }
 0x4d0   : > { %v3740_v14 = vpop.eup %3739 }
 0x4d1   : > { %v1704_v60 = vpop.xlane.xlu0 %1703  ;;  %v1707_v9 = vpop.xlane.xlu1 %1706 }
 0x4d2   : > { %3745 = vrcp.f32 %v1704_v60 }
 0x4d3   : > { %v3742_v17 = vpop.eup %3741  ;;  %3747 = vrcp.f32 %v1707_v9 }
 0x4d5   : > { %v1710_v11 = vpop.xlane.xlu0 %1709 }
 0x4d6   : > { %3749 = vrcp.f32 %v1710_v11  ;;  %v1713_v26 = vpop.xlane.xlu1 %1712 }
 0x4d7   : > { %3751 = vrcp.f32 %v1713_v26 }
 0x4d8   : > { %v3744_v62 = vpop.eup %3743 }
 0x4d9   : > { %v1716_v59 = vpop.xlane.xlu0 %1715 }
 0x4da   : > { %3753 = vrcp.f32 %v1716_v59 }
 0x4dc   : > { %v3746_v34 = vpop.eup %3745 }
 0x4dd   : > { %v3748_v8 = vpop.eup %3747 }
 0x4e0   : > { %v3750_v46 = vpop.eup %3749 }
 0x508   : > { %v1806_v56 = vpop.f32.mrb[28].mxu0 }
 0x509   : > { %v3370_v61 = vpop.f32.mrb[29].mxu0  ;;  %v2095_v4 = vmul.f32 %v3732_v28, %v1806_v56  ;;  %v3752_v28 = vpop.eup %3751 }
 0x50a   : > { %v1809_v0 = vpop.f32.mrb[30].mxu0  ;;  %v3754_v61 = vpop.eup %3753 }
 0x50b   : > { %v1850_v43 = vpop.f32.mrb[20].mxu1  ;;  %v2096_v31 = vmul.f32 %v3734_v63, %v1809_v0  ;;  %v3371_v37 = vpop.f32.mrb[31].mxu0 }
 0x50c   : > { %v3376_v44 = vpop.f32.mrb[21].mxu1  ;;  %v2097_v36 = vmul.f32 %v3736_v3, %v1850_v43 }
 0x50d   : > { %v1853_v49 = vpop.f32.mrb[22].mxu1  ;;  %v3589_v53 = vpack.i.bf16 %v2096_v31, %v2095_v4  ;;  %v1671_v4 = vpop.xlane.xlu1 %1670 }
 0x50e   : > { %v2098_v40 = vmul.f32 %v3738_v6, %v1853_v49  ;;  %v3377_v54 = vpop.f32.mrb[23].mxu1  ;;  %v1674_v31 = vpop.xlane.xlu0 %1673  ;;  %3755 = vrcp.f32 %v1671_v4 }
 0x50f   : > { %3590 = vrot.lane.b32.xlu1 %v3589_v53, %s4142_s23  ;;  %3757 = vrcp.f32 %v1674_v31  ;;  %v3659_v31 = vld [vmem:[%s4652_s3] ss:$8 sps:$4 sm:$0xff]  }
 0x510   : > { %v3594_v21 = vpack.i.bf16 %v2098_v40, %v2097_v36  ;;  %v1894_v12 = vpop.f32.mrb[32].mxu0 }
 0x511   : > { %v3382_v15 = vpop.f32.mrb[33].mxu0  ;;  %v2099_v22 = vmul.f32 %v3740_v14, %v1894_v12  ;;  %v1695_v37 = vpop.xlane.xlu1 %1694 }
 0x512   : > { %v1897_v58 = vpop.f32.mrb[34].mxu0  ;;  %v1698_v44 = vpop.xlane.xlu0 %1697  ;;  %3759 = vrcp.f32 %v1695_v37  ;;  %v3661_v37 = vld [vmem:[%s4652_s3 + $0x4] ss:$8 sps:$4 sm:$0xff]  }
 0x513   : > { %v4990_v18 = vpop.f32.mrb[24].mxu1  ;;  %v2100_v57 = vmul.f32 %v3742_v17, %v1897_v58  ;;  %3595 = vrot.lane.b32.xlu1 %v3594_v21, %s4143_s8  ;;  %v3383_v24 = vpop.f32.mrb[35].mxu0  ;;  %3761 = vrcp.f32 %v1698_v44  ;;  %v3664_v44 = vld [vmem:[%s4652_s3 + $0x14] ss:$8 sps:$4 sm:$0xff]   ;;  %2474 = vmatprep.subr.bf16.mxu0 %v3661_v37 }
 0x514   : > { %v3388_v25 = vpop.f32.mrb[25].mxu1  ;;  %2475 = vmatpush1.bf16.msra.mxu0 %v3659_v31 }
 0x515   : > { %v4994_v27 = vpop.f32.mrb[26].mxu1  ;;  %v3604_v29 = vpack.i.bf16 %v2100_v57, %v2099_v22  ;;  %2476 = vmatprep.subr.bf16.mxu0 %v3664_v44  ;;  %v3159_v44 = vld [vmem:[%s821_s28] ss:$0 sm:$0xff] }
 0x516   : > { %v3389_v30 = vpop.f32.mrb[27].mxu1 }
 0x518   : > { %v1982_v2 = vpop.f32.mrb[36].mxu0  ;;  %v3756_v49 = vpop.eup %3755 }
 0x519   : > { %v3394_v33 = vpop.f32.mrb[37].mxu0  ;;  %v2103_v7 = vmul.f32 %v3744_v62, %v1982_v2  ;;  %v3758_v53 = vpop.eup %3757  ;;  %v2093_v11 = vmul.f32 %v3756_v49, %v4980_v38 }
 0x51a   : > { %v1985_v45 = vpop.f32.mrb[38].mxu0  ;;  %v2094_v21 = vmul.f32 %v3758_v53, %v4982_v5 }
 0x51b   : > { %v2104_v10 = vmul.f32 %v3746_v34, %v1985_v45  ;;  %v3395_v39 = vpop.f32.mrb[39].mxu0 }
 0x51c   : > { %v2026_v41 = vpop.f32.mrb[28].mxu1  ;;  %v3760_v22 = vpop.eup %3759 }
 0x51d   : > { %v3400_v42 = vpop.f32.mrb[29].mxu1  ;;  %v3599_v19 = vpack.i.bf16 %v2104_v10, %v2103_v7  ;;  %v2105_v51 = vmul.f32 %v3748_v8, %v2026_v41  ;;  %v3762_v59 = vpop.eup %3761  ;;  %v2101_v32 = vmul.f32 %v3760_v22, %v4990_v18 }
 0x51e   : > { %v2029_v13 = vpop.f32.mrb[30].mxu1  ;;  %v2102_v2 = vmul.f32 %v3762_v59, %v4994_v27  ;;  %v3668_v59 = vld [vmem:[%s4652_s3 + $0x30] ss:$8 sps:$4 sm:$0xff]  }
 0x51f   : > { %v2106_v52 = vmul.f32 %v3750_v46, %v2029_v13  ;;  %v3401_v55 = vpop.f32.mrb[31].mxu1  ;;  %3600 = vrot.lane.b32.xlu0 %v3599_v19, %s4142_s23  ;;  %v3149_v46 = vld [vmem:[%s5353_s15] ss:$0 sm:$0xff]  ;;  %s3993_s15 = sshll.u32 %s4144_s2, 4  ;;  %s3994_s15 = int_to_ptr.vmem [resolvable:$false] %s3993_s15 }
 0x520   : > { %v2070_v23 = vpop.f32.mrb[40].mxu0  ;;  %s3995_s14 = scalar_lea.vmem %s3994_s15, 1024  ;;  %p3996_p4 = scmp.lt.s32.totalorder %s5135_s0, %s3994_s15 }
 0x521   : > { %v3609_v56 = vpack.i.bf16 %v2106_v52, %v2105_v51  ;;  %v3406_v60 = vpop.f32.mrb[41].mxu0  ;;  %v2107_v0 = vmul.f32 %v3752_v28, %v2070_v23  ;;  %v3779_v28 = vld [vmem:[%s4702_s5] sm:$0xff]  ;;  %p3997_p8 = scmp.lt.s32.totalorder %s3995_s14, %s3989_s21 }
 0x522   : > { %v2073_v63 = vpop.f32.mrb[42].mxu0 }
 0x523   : > { %3610 = vrot.lane.b32.xlu1 %v3609_v56, %s4143_s8  ;;  %v2108_v43 = vmul.f32 %v3754_v61, %v2073_v63  ;;  %3605 = vrot.lane.b32.xlu0 %v3604_v29, %s4141_s22  ;;  %v3407_v1 = vpop.f32.mrb[43].mxu0  ;;  %v3780_v61 = vld [vmem:[%s4702_s5 + $0x8] sm:$0xff]  ;;  %p3998_p13 = por %p3997_p8, %p3996_p4 }
 0x525   : > { %v3614_v3 = vpack.i.bf16 %v2108_v43, %v2107_v0  ;;  %v3781_v43 = vld [vmem:[%s4702_s5 + $0x10] sm:$0xff] }
 0x527   : > { %3615 = vrot.lane.b32.xlu1 %v3614_v3, %s4141_s22  ;;  %v3782_v3 = vld [vmem:[%s4702_s5 + $0x18] sm:$0xff]  ;;  %s5362_s22 = sld [smem:[#allocation54_spill]] }
 0x52d   : > { %s5363_s8 = smov %s5362_s22  ;;  %s5133_s23 = scalar_lea.hbm %s5362_s22, %s3207_s17 }
 0x581   : > { %v3591_v6 = vpop.permute.xlu1 %3590 }
 0x582   : > { %v3593_v40 = vunpack.i.h.bf16 %v3591_v6  ;;  %v3592_v54 = vunpack.i.l.bf16 %v3591_v6  ;;  %v3662_v6 = vld [vmem:[%s4652_s3 + $0x10] ss:$8 sps:$4 sm:$0xff]  }
 0x583   : > { %2477 = vmatpush1.bf16.msra.mxu0 %v3662_v6 }
 0x584   : > { %v2158_v17 = vsel %vm1195_vm1, %v2094_v21, %v3593_v40  ;;  %v2157_v58 = vsel %vm1195_vm1, %v2093_v11, %v3592_v54 }
 0x585   : > { %v3596_v36 = vpop.permute.xlu1 %3595 }
 0x586   : > { %v3598_v12 = vunpack.i.h.bf16 %v3596_v36  ;;  %v3597_v14 = vunpack.i.l.bf16 %v3596_v36 }
 0x588   : > { %v2162_v38 = vsel %vm2161_vm3, %v2157_v58, %v3597_v14  ;;  %v2163_v5 = vsel %vm2161_vm3, %v2158_v17, %v3598_v12 }
 0x591   : > { %v3601_v9 = vpop.permute.xlu0 %3600 }
 0x592   : > { %v3603_v57 = vunpack.i.h.bf16 %v3601_v9  ;;  %v3602_v24 = vunpack.i.l.bf16 %v3601_v9 }
 0x594   : > { %v2160_v35 = vsel %vm1195_vm1, %v2102_v2, %v3603_v57  ;;  %v2159_v7 = vsel %vm1195_vm1, %v2101_v32, %v3602_v24  ;;  %v3667_v24 = vld [vmem:[%s4652_s3 + $0x24] ss:$8 sps:$4 sm:$0xff]   ;;  %v3677_v2 = vld [vmem:[%s4652_s3 + $0x60] ss:$8 sps:$4 sm:$0xff]  }
 0x595   : > { %v3611_v15 = vpop.permute.xlu1 %3610  ;;  %v3606_v20 = vpop.permute.xlu0 %3605  ;;  %2478 = vmatprep.subr.bf16.mxu0 %v3667_v24  ;;  %v3679_v32 = vld [vmem:[%s4652_s3 + $0x64] ss:$8 sps:$4 sm:$0xff]   ;;  %v2382_v24 = vld [vmem:[%s4680_s26] sm:$0x3] }
 0x596   : > { %v3608_v25 = vunpack.i.h.bf16 %v3606_v20  ;;  %v3607_v26 = vunpack.i.l.bf16 %v3606_v20  ;;  %v3613_v29 = vunpack.i.h.bf16 %v3611_v15  ;;  %v3612_v30 = vunpack.i.l.bf16 %v3611_v15 }
 0x598   : > { %v2167_v62 = vsel %vm2166_vm4, %v2162_v38, %v3607_v26  ;;  %v2168_v33 = vsel %vm2166_vm4, %v2163_v5, %v3608_v25  ;;  %v2164_v41 = vsel %vm2161_vm3, %v2159_v7, %v3612_v30  ;;  %v2165_v18 = vsel %vm2161_vm3, %v2160_v35, %v3613_v29  ;;  %v3665_v25 = vld [vmem:[%s4652_s3 + $0x20] ss:$8 sps:$4 sm:$0xff]   ;;  %v3670_v26 = vld [vmem:[%s4652_s3 + $0x34] ss:$8 sps:$4 sm:$0xff]   ;;  %v3673_v38 = vld [vmem:[%s4652_s3 + $0x44] ss:$8 sps:$4 sm:$0xff]  }
 0x599   : > { %v3616_v34 = vpop.permute.xlu1 %3615  ;;  %v2171_v45 = vpack.c.bf16 %v2168_v33, %v2167_v62  ;;  %2479 = vmatpush1.bf16.msra.mxu0 %v3665_v25  ;;  %v3671_v5 = vld [vmem:[%s4652_s3 + $0x40] ss:$8 sps:$4 sm:$0xff]   ;;  %v3676_v29 = vld [vmem:[%s4652_s3 + $0x54] ss:$8 sps:$4 sm:$0xff]   ;;  %v3674_v30 = vld [vmem:[%s4652_s3 + $0x50] ss:$8 sps:$4 sm:$0xff]   ;;  %v2391_v25 = vrot.slane %v2382_v24, %v898_v50 }
 0x59a   : > { %v3618_v10 = vunpack.i.h.bf16 %v3616_v34  ;;  %v3617_v39 = vunpack.i.l.bf16 %v3616_v34  ;;  %2480 = vmatprep.subr.bf16.mxu0 %v3670_v26  ;;  %v3682_v62 = vld [vmem:[%s4652_s3 + $0x74] ss:$8 sps:$4 sm:$0xff]   ;;  %v3680_v33 = vld [vmem:[%s4652_s3 + $0x70] ss:$8 sps:$4 sm:$0xff]   ;;  %v3683_v34 = vld [vmem:[%s4698_s30 + $0x40] sm:$0xff]  }
 0x59b   : > { %3424 = vmatprep.mubr.bf16.mxu1 %v2171_v45  ;;  %v3684_v45 = vld [vmem:[%s4698_s30] sm:$0xff]   ;;  %v3685_v35 = vld [vmem:[%s4698_s30 + $0x48] sm:$0xff]   ;;  %3264 = vmatprep.subr.bf16.mxu1 %v3683_v34 }
 0x59c   : > { %v2170_v27 = vsel %vm2166_vm4, %v2165_v18, %v3618_v10  ;;  %v2169_v8 = vsel %vm2166_vm4, %v2164_v41, %v3617_v39  ;;  %v3686_v7 = vld [vmem:[%s4698_s30 + $0x8] sm:$0xff]   ;;  %v3687_v10 = vld [vmem:[%s4698_s30 + $0x50] sm:$0xff]   ;;  %v3689_v41 = vld [vmem:[%s4698_s30 + $0x58] sm:$0xff]  }
 0x59d   : > { %v2172_v42 = vpack.c.bf16 %v2170_v27, %v2169_v8  ;;  %2481 = vmatpush1.bf16.msra.mxu0 %v3668_v59  ;;  %v3688_v39 = vld [vmem:[%s4698_s30 + $0x10] sm:$0xff]   ;;  %v3690_v18 = vld [vmem:[%s4698_s30 + $0x18] sm:$0xff]   ;;  %v3691_v27 = vld [vmem:[%s4698_s30 + $0x60] sm:$0xff]  }
 0x59e   : > { %2482 = vmatprep.subr.bf16.mxu0 %v3673_v38  ;;  %v3692_v8 = vld [vmem:[%s4698_s30 + $0x20] sm:$0xff]  }
 0x59f   : > { %3425 = vmatmul.mubr.bf16.vlgmr.msra.gmra.mrb[32].mxu1 %v2172_v42  ;;  %v3693_v42 = vld [vmem:[%s4698_s30 + $0x68] sm:$0xff]  }
 0x5a0   : > { %3265 = vmatpush3.bf16.msra.mxu1 %v3684_v45 }
 0x5a1   : > { %2483 = vmatpush1.bf16.msra.mxu0 %v3671_v5  ;;  %3266 = vmatprep.subr.bf16.mxu1 %v3685_v35 }
 0x5a2   : > { %2484 = vmatprep.subr.bf16.mxu0 %v3676_v29 }
 0x5a4   : > { %3267 = vmatpush3.bf16.msra.mxu1 %v3686_v7 }
 0x5a5   : > { %2485 = vmatpush1.bf16.msra.mxu0 %v3674_v30  ;;  %3268 = vmatprep.subr.bf16.mxu1 %v3687_v10 }
 0x5a6   : > { %2486 = vmatprep.subr.bf16.mxu0 %v3679_v32 }
 0x5a8   : > { %3269 = vmatpush3.bf16.msra.mxu1 %v3688_v39 }
 0x5a9   : > { %2487 = vmatpush1.bf16.msra.mxu0 %v3677_v2  ;;  %3270 = vmatprep.subr.bf16.mxu1 %v3689_v41 }
 0x5aa   : > { %2488 = vmatprep.subr.bf16.mxu0 %v3682_v62 }
 0x5ac   : > { %3271 = vmatpush3.bf16.msra.mxu1 %v3690_v18 }
 0x5ad   : > { %2489 = vmatpush1.bf16.msra.mxu0 %v3680_v33  ;;  %3272 = vmatprep.subr.bf16.mxu1 %v3691_v27 }
 0x5b0   : > { %3273 = vmatpush3.bf16.msra.mxu1 %v3692_v8 }
 0x5b1   : > { %3274 = vmatprep.subr.bf16.mxu1 %v3693_v42 }
 0x672   : > { %v3426_v19 = vpop.f32.mrb[32].mxu1 }
 0x673   : > { %v2278_v13 = vpop.f32.mrb[33].mxu1  ;;  %v2287_v56 = vadd.f32 %v3426_v19, %v3149_v46 }
 0x674   : > { %v2279_v51 = vadd.f32 %v3149_v46, %v2278_v13  ;;  %v3427_v52 = vpop.f32.mrb[34].mxu1 }
 0x675   : > { %v2281_v55 = vpop.f32.mrb[35].mxu1  ;;  %v2290_v0 = vadd.f32 %v3427_v52, %v3149_v46  ;;  %v2295_v1 = vadd.f32 %v3781_v43, %v2287_v56  ;;  %v3158_v43 = vld [vmem:[%s818_s16] ss:$0 sm:$0xff] }
 0x676   : > { %v2282_v23 = vadd.f32 %v3149_v46, %v2281_v55  ;;  %v2293_v60 = vadd.f32 %v3779_v28, %v2279_v51 }
 0x677   : > { %v2296_v4 = vadd.f32 %v3782_v3, %v2290_v0 }
 0x678   : > { %2297 = vadd.xlane.f32.xlu0 %v2293_v60  ;;  %v2294_v63 = vadd.f32 %v3780_v61, %v2282_v23 }
 0x67a   : > { %2299 = vadd.xlane.f32.xlu1 %v2294_v63 }
 0x67c   : > { %2301 = vadd.xlane.f32.xlu0 %v2295_v1 }
 0x680   : > { %2303 = vadd.xlane.f32.xlu0 %v2296_v4 }
 0x705   : > { %v2298_v49 = vpop.xlane.xlu0 %2297 }
 0x706   : > { %v2306_v53 = vmul.f32 0.0078125, %v2298_v49 }
 0x707   : > { %v2300_v36 = vpop.xlane.xlu1 %2299 }
 0x708   : > { %v5031_v40 = vsub.f32 %v2293_v60, %v2306_v53  ;;  %v2307_v54 = vmul.f32 0.0078125, %v2300_v36 }
 0x709   : > { %v2302_v9 = vpop.xlane.xlu0 %2301 }
 0x70a   : > { %v5033_v11 = vsub.f32 %v2294_v63, %v2307_v54  ;;  %v2308_v21 = vmul.f32 0.0078125, %v2302_v9  ;;  %v2314_v12 = vmul.f32 %v5031_v40, %v5031_v40 }
 0x70c   : > { %v5037_v14 = vsub.f32 %v2295_v1, %v2308_v21  ;;  %2318 = vadd.xlane.f32.xlu1 %v2314_v12  ;;  %v2315_v15 = vmul.f32 %v5033_v11, %v5033_v11 }
 0x70d   : > { %v2304_v17 = vpop.xlane.xlu0 %2303 }
 0x70e   : > { %v2309_v58 = vmul.f32 0.0078125, %v2304_v17  ;;  %2320 = vadd.xlane.f32.xlu0 %v2315_v15  ;;  %v2316_v20 = vmul.f32 %v5037_v14, %v5037_v14  ;;  %v3694_v17 = vld [vmem:[%s4698_s30 + $0x28] sm:$0xff]  }
 0x70f   : > { %3275 = vmatpush3.bf16.msra.mxu1 %v3694_v17 }
 0x710   : > { %v5043_v22 = vsub.f32 %v2296_v4, %v2309_v58  ;;  %2322 = vadd.xlane.f32.xlu1 %v2316_v20  ;;  %v3695_v58 = vld [vmem:[%s4698_s30 + $0x70] sm:$0xff]  }
 0x711   : > { %v3696_v20 = vld [vmem:[%s4698_s30 + $0x30] sm:$0xff]   ;;  %3276 = vmatprep.subr.bf16.mxu1 %v3695_v58 }
 0x712   : > { %v2317_v57 = vmul.f32 %v5043_v22, %v5043_v22 }
 0x713   : > { %3277 = vmatpush3.bf16.msra.mxu1 %v3696_v20 }
 0x714   : > { %2324 = vadd.xlane.f32.xlu0 %v2317_v57  ;;  %v3698_v57 = vld [vmem:[%s4698_s30 + $0x38] sm:$0xff]  }
 0x799   : > { %v2319_v46 = vpop.xlane.xlu1 %2318 }
 0x79a   : > { %v2326_v19 = vmul.f32 0.0078125, %v2319_v46 }
 0x79b   : > { %v2321_v13 = vpop.xlane.xlu0 %2320 }
 0x79c   : > { %v2330_v51 = vadd.f32 1e-05, %v2326_v19  ;;  %v2327_v52 = vmul.f32 0.0078125, %v2321_v13 }
 0x79d   : > { %v2323_v55 = vpop.xlane.xlu1 %2322 }
 0x79e   : > { %3763 = vrsqrt.f32 %v2330_v51  ;;  %v2331_v56 = vadd.f32 1e-05, %v2327_v52  ;;  %v2328_v23 = vmul.f32 0.0078125, %v2323_v55 }
 0x7a0   : > { %3765 = vrsqrt.f32 %v2331_v56  ;;  %v2332_v28 = vadd.f32 1e-05, %v2328_v23 }
 0x7a1   : > { %v2325_v60 = vpop.xlane.xlu0 %2324 }
 0x7a2   : > { %3767 = vrsqrt.f32 %v2332_v28  ;;  %v2329_v61 = vmul.f32 0.0078125, %v2325_v60 }
 0x7a4   : > { %v2333_v63 = vadd.f32 1e-05, %v2329_v61 }
 0x7a6   : > { %3769 = vrsqrt.f32 %v2333_v63 }
 0x7a8   : > { %v3764_v0 = vpop.eup %3763 }
 0x7a9   : > { %v2338_v1 = vmul.f32 %v3764_v0, %v5031_v40 }
 0x7aa   : > { %v3766_v3 = vpop.eup %3765 }
 0x7ab   : > { %v2339_v4 = vmul.f32 %v3766_v3, %v5033_v11  ;;  %v2349_v31 = vmul.f32 %v3158_v43, %v2338_v1 }
 0x7ac   : > { %v3768_v37 = vpop.eup %3767 }
 0x7ad   : > { %v2350_v6 = vmul.f32 %v3158_v43, %v2339_v4  ;;  %v5082_v49 = vadd.f32 %v3159_v44, %v2349_v31  ;;  %v2340_v36 = vmul.f32 %v3768_v37, %v5037_v14 }
 0x7af   : > { %v5084_v53 = vadd.f32 %v3159_v44, %v2350_v6  ;;  %v2351_v11 = vmul.f32 %v3158_v43, %v2340_v36 }
 0x7b0   : > { %v3770_v40 = vpop.eup %3769 }
 0x7b1   : > { %v2364_v54 = vpack.c.bf16 %v5084_v53, %v5082_v49  ;;  %v2341_v9 = vmul.f32 %v3770_v40, %v5043_v22  ;;  %v5093_v15 = vadd.f32 %v3159_v44, %v2351_v11  ;;  %v3697_v22 = vld [vmem:[%s4698_s30 + $0x78] sm:$0xff]   ;;  %s5356_s30 = sld [smem:[#allocation49_spill]] }
 0x7b2   : > { %3278 = vmatprep.subr.bf16.mxu1 %v3697_v22 }
 0x7b3   : > { %2507 = vmatmul.mubr.bf16.vlgmr.msra.gmra.mrb[44].mxu0 %v2364_v54  ;;  %v2352_v21 = vmul.f32 %v3158_v43, %v2341_v9  ;;  %3279 = vmatpush3.bf16.msra.mxu1 %v3698_v57 }
 0x7b4   : > { %2516 = vmatprep.mubr.bf16.mxu0 %v4138_v16  ;;  %v2387_v16 = vrot.slane %v2382_v24, %v894_v48 }
 0x7b5   : > { %v5091_v12 = vadd.f32 %v3159_v44, %v2352_v21 }
 0x7b7   : > { %v2365_v14 = vpack.c.bf16 %v5091_v12, %v5093_v15  ;;  %s5357_s16 = scalar_lea.vmem %s5356_s30, %s4660_s11 }
 0x7b8   : > { %v3176_v55 = vld [vmem:[%s5357_s16] ss:$0 sm:$0xff] }
 0x7bb   : > { %2517 = vmatmul.mubr.bf16.gmra.mrb[48].mxu0 %v2365_v14 }
 0x886   : > { %v2508_v26 = vpop.f32.mrb[44].mxu0 }
 0x887   : > { %v2509_v59 = vadd.f32 %v2508_v26, %v2387_v16  ;;  %v2510_v38 = vpop.f32.mrb[45].mxu0 }
 0x888   : > { %v2511_v5 = vadd.f32 %v2510_v38, %v2391_v25  ;;  %v2512_v29 = vpop.f32.mrb[46].mxu0 }
 0x889   : > { %v2513_v30 = vadd.f32 %v2512_v29, %v2387_v16  ;;  %v2514_v32 = vpop.f32.mrb[47].mxu0  ;;  %v2527_v62 = vmax.f32 %v2509_v59, 0.0 }
 0x88a   : > { %v2515_v2 = vadd.f32 %v2514_v32, %v2391_v25  ;;  %v2528_v34 = vmax.f32 %v2511_v5, 0.0 }
 0x88b   : > { %v2529_v33 = vmax.f32 %v2513_v30, 0.0 }
 0x88c   : > { %v2530_v45 = vmax.f32 %v2515_v2, 0.0 }
 0x88d   : > { %v2535_v35 = vpack.c.bf16 %v2529_v33, %v2527_v62 }
 0x88e   : > { %v2536_v7 = vpack.c.bf16 %v2530_v45, %v2528_v34  ;;  %v2518_v10 = vpop.f32.mrb[48].mxu0 }
 0x88f   : > { %v2519_v39 = vadd.f32 %v2518_v10, %v2387_v16  ;;  %v2520_v48 = vpop.f32.mrb[49].mxu0  ;;  %v3193_v10 = vld [vmem:[%s824_s20] ss:$0 sm:$0xff]  ;;  %s5361_s20 = sld [smem:[#allocation36_spill]] }
 0x890   : > { %v2521_v41 = vadd.f32 %v2520_v48, %v2391_v25  ;;  %v2522_v47 = vpop.f32.mrb[50].mxu0  ;;  %2706 = vmatprep.mubr.bf16.mxu1 %v2536_v7 }
 0x891   : > { %v2523_v50 = vadd.f32 %v2522_v47, %v2387_v16  ;;  %v2524_v18 = vpop.f32.mrb[51].mxu0  ;;  %2707 = vmatmul.mubr.bf16.vlgmr.msra.gmra.mrb[36].mxu1 %v2535_v35  ;;  %v2531_v8 = vmax.f32 %v2519_v39, 0.0 }
 0x892   : > { %v2525_v27 = vadd.f32 %v2524_v18, %v2391_v25  ;;  %v2532_v46 = vmax.f32 %v2521_v41, 0.0  ;;  %v3194_v41 = vld [vmem:[%s827_s19] ss:$0 sm:$0xff] }
 0x893   : > { %v2533_v42 = vmax.f32 %v2523_v50, 0.0 }
 0x894   : > { %v2534_v19 = vmax.f32 %v2525_v27, 0.0 }
 0x895   : > { %v2537_v13 = vpack.c.bf16 %v2533_v42, %v2531_v8  ;;  %p5364_p2 = scmp.ne.s32.totalorder %s5361_s20, 0 }
 0x896   : > { %v2538_v51 = vpack.c.bf16 %v2534_v19, %v2532_v46 }
 0x897   : > { %p3991_p9 = pnand %p3990_p10, %p5364_p2 }
 0x898   : > { %2714 = vmatprep.mubr.bf16.mxu1 %v2538_v51 }
 0x899   : > { %2715 = vmatmul.mubr.bf16.gmra.mrb[40].mxu1 %v2537_v13  ;;  %p3992_p11 = pneg %p3991_p9 }
 0x89b   : > { %p3999_p1 = pnand %p3998_p13, %p3992_p11 }
 0x964   : > { %v3280_v52 = vpop.f32.mrb[36].mxu1 }
 0x965   : > { %v3281_v56 = vpop.f32.mrb[37].mxu1 }
 0x966   : > { %v3282_v23 = vadd.f32 %v3281_v56, %v3280_v52  ;;  %v3283_v28 = vpop.f32.mrb[38].mxu1 }
 0x967   : > { %v3284_v60 = vpop.f32.mrb[39].mxu1 }
 0x968   : > { %v2709_v61 = vadd.f32 %v3282_v23, %v3176_v55  ;;  %v3285_v63 = vadd.f32 %v3284_v60, %v3283_v28 }
 0x96a   : > { %v2712_v0 = vadd.f32 %v3285_v63, %v3176_v55  ;;  %v2723_v43 = vadd.f32 %v2709_v61, %v5082_v49 }
 0x96c   : > { %v3286_v1 = vpop.f32.mrb[40].mxu1  ;;  %2727 = vadd.xlane.f32.xlu1 %v2723_v43  ;;  %v2724_v3 = vadd.f32 %v2712_v0, %v5084_v53 }
 0x96d   : > { %v3287_v4 = vpop.f32.mrb[41].mxu1 }
 0x96e   : > { %v3288_v31 = vadd.f32 %v3287_v4, %v3286_v1  ;;  %v3289_v37 = vpop.f32.mrb[42].mxu1  ;;  %2729 = vadd.xlane.f32.xlu0 %v2724_v3 }
 0x96f   : > { %v3290_v44 = vpop.f32.mrb[43].mxu1 }
 0x970   : > { %v2717_v6 = vadd.f32 %v3288_v31, %v3176_v55  ;;  %v3291_v36 = vadd.f32 %v3290_v44, %v3289_v37 }
 0x972   : > { %v2720_v40 = vadd.f32 %v3291_v36, %v3176_v55  ;;  %v2725_v54 = vadd.f32 %v2717_v6, %v5093_v15 }
 0x974   : > { %2731 = vadd.xlane.f32.xlu1 %v2725_v54  ;;  %v2726_v9 = vadd.f32 %v2720_v40, %v5091_v12 }
 0x976   : > { %2733 = vadd.xlane.f32.xlu0 %v2726_v9 }
 0x9f9   : > { %v2728_v11 = vpop.xlane.xlu1 %2727 }
 0x9fa   : > { %v2735_v49 = vmul.f32 0.0078125, %v2728_v11 }
 0x9fb   : > { %v2730_v21 = vpop.xlane.xlu0 %2729 }
 0x9fc   : > { %v2739_v14 = vsub.f32 %v2723_v43, %v2735_v49  ;;  %v2736_v17 = vmul.f32 0.0078125, %v2730_v21 }
 0x9fe   : > { %v2740_v53 = vsub.f32 %v2724_v3, %v2736_v17  ;;  %v2743_v58 = vmul.f32 %v2739_v14, %v2739_v14 }
 0xa00   : > { %2747 = vadd.xlane.f32.xlu1 %v2743_v58  ;;  %v2744_v20 = vmul.f32 %v2740_v53, %v2740_v53 }
 0xa01   : > { %v2732_v22 = vpop.xlane.xlu1 %2731 }
 0xa02   : > { %v2737_v57 = vmul.f32 0.0078125, %v2732_v22  ;;  %2749 = vadd.xlane.f32.xlu0 %v2744_v20 }
 0xa03   : > { %v2734_v24 = vpop.xlane.xlu0 %2733 }
 0xa04   : > { %v2741_v16 = vsub.f32 %v2725_v54, %v2737_v57  ;;  %v2738_v25 = vmul.f32 0.0078125, %v2734_v24 }
 0xa06   : > { %v2742_v15 = vsub.f32 %v2726_v9, %v2738_v25  ;;  %v2745_v26 = vmul.f32 %v2741_v16, %v2741_v16 }
 0xa08   : > { %2751 = vadd.xlane.f32.xlu1 %v2745_v26  ;;  %v2746_v12 = vmul.f32 %v2742_v15, %v2742_v15 }
 0xa0a   : > { %2753 = vadd.xlane.f32.xlu0 %v2746_v12 }
 0xa8d   : > { %v2748_v59 = vpop.xlane.xlu1 %2747 }
 0xa8e   : > { %v2755_v38 = vmul.f32 0.0078125, %v2748_v59 }
 0xa8f   : > { %v2750_v5 = vpop.xlane.xlu0 %2749 }
 0xa90   : > { %v2759_v29 = vadd.f32 1e-05, %v2755_v38  ;;  %v2756_v30 = vmul.f32 0.0078125, %v2750_v5 }
 0xa92   : > { %3771 = vrsqrt.f32 %v2759_v29  ;;  %v2760_v32 = vadd.f32 1e-05, %v2756_v30 }
 0xa94   : > { %3773 = vrsqrt.f32 %v2760_v32 }
 0xa95   : > { %v2752_v2 = vpop.xlane.xlu1 %2751 }
 0xa96   : > { %v2757_v62 = vmul.f32 0.0078125, %v2752_v2 }
 0xa97   : > { %v2754_v33 = vpop.xlane.xlu0 %2753 }
 0xa98   : > { %v2761_v34 = vadd.f32 1e-05, %v2757_v62  ;;  %v2758_v45 = vmul.f32 0.0078125, %v2754_v33 }
 0xa9a   : > { %3775 = vrsqrt.f32 %v2761_v34  ;;  %v2762_v35 = vadd.f32 1e-05, %v2758_v45 }
 0xa9c   : > { %v3772_v7 = vpop.eup %3771  ;;  %3777 = vrsqrt.f32 %v2762_v35 }
 0xa9d   : > { %v2767_v39 = vmul.f32 %v3772_v7, %v2739_v14 }
 0xa9e   : > { %v3774_v48 = vpop.eup %3773 }
 0xa9f   : > { %v2778_v47 = vmul.f32 %v3193_v10, %v2767_v39  ;;  %v2768_v50 = vmul.f32 %v3774_v48, %v2740_v53 }
 0xaa1   : > { %v2789_v18 = vadd.f32 %v3194_v41, %v2778_v47  ;;  %v2779_v27 = vmul.f32 %v3193_v10, %v2768_v50 }
 0xaa3   : > { %2793 = vst [vmem:[%s4702_s5] sm:$0xff] %v2789_v18  ;;  %v2790_v8 = vadd.f32 %v3194_v41, %v2779_v27 }
 0xaa4   : > { %v3776_v42 = vpop.eup %3775 }
 0xaa5   : > { %2794 = vst [vmem:[%s4702_s5 + $0x8] sm:$0xff] %v2790_v8  ;;  %v2769_v46 = vmul.f32 %v3776_v42, %v2741_v16 }
 0xaa6   : > { %v3778_v19 = vpop.eup %3777 }
 0xaa7   : > { %v2780_v13 = vmul.f32 %v3193_v10, %v2769_v46  ;;  %v2770_v51 = vmul.f32 %v3778_v19, %v2742_v15 }
 0xaa9   : > { %v2791_v52 = vadd.f32 %v3194_v41, %v2780_v13  ;;  %v2781_v55 = vmul.f32 %v3193_v10, %v2770_v51 }
 0xaab   : > { %2795 = vst [vmem:[%s4702_s5 + $0x10] sm:$0xff] %v2791_v52  ;;  %v2792_v56 = vadd.f32 %v3194_v41, %v2781_v55 }
 0xaad   : > { %2796 = vst [vmem:[%s4702_s5 + $0x18] sm:$0xff] %v2792_v56 }
 0xaae   : > { %4002 = shalt.err (!%p3999_p1)
}
 0xaaf   : > { %s4003_s5 = scalar_lea.hbm %s5133_s23, 512  ;;  %s4007_s25 = scalar_lea.hbm %s5363_s8, 1024 }
 0xab0   : > { %p4004_p7 = scmp.ne.s32.totalorder %s5133_s23, %s4003_s5  ;;  %p4008_p5 = scmp.lt.u32.totalorder %s5133_s23, %s5363_s8 }
 0xab1   : > { %p4009_p6 = scmp.lt.u32.totalorder %s4007_s25, %s4003_s5  ;;  %p4011_p10 = scmp.lt.u32.totalorder %s4003_s5, %s5133_s23 }
 0xab2   : > { %p4005_p12 = pnand %p4004_p7, %p5364_p2 }
 0xab3   : > { %p4010_p3 = por %p4009_p6, %p4008_p5 }
 0xab4   : > { %p4006_p0 = pneg %p4005_p12 }
 0xab5   : > { %p4012_p9 = por %p4011_p10, %p4010_p3 }
 0xab7   : > { %p4013_p11 = pnand %p4012_p9, %p4006_p0 }
 0xab9   : > { %4016 = shalt.err (!%p4013_p11)
}
 0xaba   : > { %s4145_s26 = smov 128   ;;  %s4146_s28 = smov 8  }
 0xabb   : > { %3450 = dma.vmem_to_hbm [thread:$0]  (%p5364_p2), %s5135_s0, 512, %s5133_s23, %s2798_s7, %s4145_s26, %s4145_s26, %s4146_s28  }
 0xabc PF: > { %s5365_s30 = sld [smem:[#allocation29_spill]]  ;;  %s5366_s16 = sld [smem:[#allocation22_spill]] }
 0xabd   : > { %s5367_s10 = sld [smem:[#allocation32_spill]] }
 0xac2   : > { %p3484_p4 = scmp.ge.s32.totalorder %s5365_s30, 2  ;;  %s2827_s4 = sand.u32 1, %s5366_s16  }
 0xac3   : > { %p5368_p8 = scmp.ne.s32.totalorder %s5367_s10, 0  ;;  %s2828_s6 = scalar_lea.sflag [#allocation4], %s2827_s4 }
 0xac5   : > { %p3476_p13 = pnand %p3484_p4, %p5368_p8 }
 0xac7   : > { %4078 = dma.done.wait (!%p3476_p13), %s2828_s6, 512  }
 0xac8   : > { %4080 = vsyncadd (!%p3476_p13), %s2828_s6, 4294966784  ;;  %s38_s28 = sadd.s32 1, %s5365_s30   ;;  %s5369_s18 = sld [smem:[#allocation20_spill]] }
 0xac9   : > { %p35_p1 = scmp.ge.s32.totalorder %s38_s28, 6   ;;  %s5370_s19 = sld [smem:[#allocation21_spill]] }
 0xaca   : > { %s5371_s20 = sld [smem:[#allocation35_spill]]  ;;  %s5372_s21 = sld [smem:[#allocation23_spill]] }
 0xacb   : > { %s5373_s22 = sld [smem:[#allocation24_spill]]  ;;  %s5374_s23 = sld [smem:[#allocation38_spill]] }
 0xacc   : > { %s5375_s24 = sld [smem:[#allocation27_spill]]  ;;  %s5376_s25 = sld [smem:[#allocation28_spill]] }
 0xacd   : > { %s5377_s26 = sld [smem:[#allocation34_spill]]  ;;  %s5378_s27 = sld [smem:[#allocation37_spill]] }
 0xace   :  { %37 = sbr.rel (!%p35_p1) target bundleno = 31 (0x1f), region = 209 }
 0xad5   :  { %2833 = vsyncpa [#allocation3], 1 }
 0xad6   :  { %2835 = vsyncpa [#allocation3 + $0x1], 1 }
 0xad7   :  { %2836 = vsyncpa [#allocation6], 1 }
 0xad8   :  { %2837 = vsyncpa [#allocation9], 1 }
 0xad9   :  { %2839 = vsyncpa [#allocation9 + $0x1], 1 }
 0xada   :  { %2840 = vsyncpa [#allocation12], 1 }
 0xadb   :  { %2842 = vsyncpa [#allocation12 + $0x1], 1 }
 0xadc   :  { %2843 = vsyncpa [#allocation4], 1 }
 0xadd   :  { %2845 = vsyncpa [#allocation4 + $0x1], 1 }

</bundles_post_ra>
